<compile_context>
chip_gen: v7x
topology: tpu7x:2x2x1
jax: 0.10.0
libtpu: 0.0.40
codegen_flags: <defaults>
</compile_context>

<pallas_src>
import functools

import jax
import jax.numpy as jnp
import numpy as np
from jax import lax
from jax.experimental import pallas as pl
from jax.experimental.pallas import tpu as pltpu

# Kept so the exact-f32 path matches the pure-JAX reference at 1e-4; the bf16
# production path casts its operands explicitly and is unaffected by this flag.
jax.config.update("jax_default_matmul_precision", "highest")


def _local_attention_kernel(
    ht_ref, hs_ref,
    wpa_ref, bp_ref, wv_ref, bv_ref, ba_ref, wc1_ref, wc2_ref, bc_ref,
    out_ref,
    *, hidden, seq_len, full_hidden, context_size, rows, out_pad,
    approx_recip, mm_dtype,
):
    """One grid step = one block of `rows` (layer, batch) rows, r = l*B + b."""
    h, S = hidden, seq_len
    W = 2 * context_size + 1
    RB = rows

    ht = ht_ref[...]                                   # (RB, h)  f32
    hs = hs_ref[...]                                   # (RB, S, h)  f32 or bf16

    # --- fused ht projection: [W_p | W_a^T] in one (RB, h) x (h, 2h) matmul -----
    # Kept f32 ("position path") so base = trunc(pt) never shifts under bf16.
    proj = jnp.dot(ht, wpa_ref[...], preferred_element_type=jnp.float32)   # (RB, 2h)
    p = jnp.tanh(proj[:, :h] + bp_ref[...])                                # (RB, h)
    u = proj[:, h:]                                    # (RB, h) == W_a^T ht

    # --- predicted position: pt = sigmoid(v_p(tanh(W_p ht + b_p))) * S ----------
    s = jnp.sum(p * wv_ref[...], axis=-1, keepdims=True) + bv_ref[...]     # (RB, 1)
    pt = jax.nn.sigmoid(s) * float(S)                  # (RB, 1)
    base = pt.astype(jnp.int32)                        # trunc, like torch .int()

    # --- gaussian-like weighting around the predicted position ------------------
    w_off = lax.broadcasted_iota(jnp.int32, (RB, W), 1) - context_size
    diff = ((base + w_off).astype(jnp.float32) - pt) / float(full_hidden)
    kern = jnp.exp(-2.0 * diff * diff)                 # (RB, W)

    # --- zero-padded window gather as one one-hot batched MXU dot ---------------
    # sel[r, w, s] == 1 iff s == base[r] + w - context_size; out-of-range -> zeros
    w3 = lax.broadcasted_iota(jnp.int32, (RB, W, S), 1) - context_size
    s3 = lax.broadcasted_iota(jnp.int32, (RB, W, S), 2)
    sel = (s3 == base[:, :, None] + w3).astype(hs.dtype)                   # (RB, W, S)
    hs_win = lax.dot_general(sel, hs, (((2,), (1,)), ((0,), (0,))),
                             preferred_element_type=jnp.float32)           # (RB, W, h)

    # --- scores: ht.(W_a x + b_a) == u.x + ht.b_a  (VPU multiply + lane reduce) -
    d = jnp.sum(ht * ba_ref[...], axis=-1, keepdims=True)                  # (RB, 1)
    scores = jnp.sum(u[:, None, :] * hs_win, axis=-1) + d                  # (RB, W)
    m = jnp.max(scores, axis=-1, keepdims=True)
    e = jnp.exp(scores - m)
    denom = jnp.sum(e, axis=-1, keepdims=True)
    if approx_recip:                                   # production: EUP reciprocal
        attn = e * pl.reciprocal(denom, approx=True) * kern
    else:                                              # test path: exact division
        attn = (e / denom) * kern                      # (RB, W)

    # --- context vector + split output projection (no [ct, ht] lane concat) -----
    ct = jnp.sum(attn[:, :, None] * hs_win, axis=1)                        # (RB, h)
    out = jnp.tanh(
        jnp.dot(ct.astype(mm_dtype), wc1_ref[...], preferred_element_type=jnp.float32)
        + jnp.dot(ht.astype(mm_dtype), wc2_ref[...], preferred_element_type=jnp.float32)
        + bc_ref[...]
    )                                                  # (RB, h)

    # --- single lane-dense output slab: [ c | attn | 0-pad ] ---------------------
    pad = out_pad - (h + W)
    pieces = [out, attn]
    if pad > 0:
        pieces.append(jnp.zeros((RB, pad), jnp.float32))
    out_ref[...] = jnp.concatenate(pieces, axis=-1)


def local_attention_forward(hs, ht, params, context_size, *,
                            use_bf16=False, approx_softmax=False):
    """hs: (B, S, L*h), ht: (L, B, h) -> (c: (L, B, h), attentions: (L, B, 2*c+1))."""
    L, B, h = ht.shape
    B2, S, H = hs.shape
    assert B2 == B and H == L * h
    W = 2 * context_size + 1
    R = L * B
    RB = 8                                        # sublane-aligned row block
    Rp = -(-R // RB) * RB                         # pad rows to a multiple of RB
    out_pad = max(128, -(-(h + W) // 128) * 128)  # lane-dense merged [c | attn] slab

    mm_dtype = jnp.bfloat16 if use_bf16 else jnp.float32

    # Row r = l*B + b; one wrapper-side relayout of hs to layer-major rows so the
    # in-kernel gather produces (R, W, h) directly.
    ht_rows = ht.reshape(R, h).astype(jnp.float32)
    hs_rows = (hs.reshape(B, S, L, h).transpose(2, 0, 1, 3)
                 .reshape(R, S, h).astype(mm_dtype))
    if Rp != R:
        ht_rows = jnp.pad(ht_rows, ((0, Rp - R), (0, 0)))
        hs_rows = jnp.pad(hs_rows, ((0, Rp - R), (0, 0), (0, 0)))

    # Fused [W_p | W_a^T] weight (position path stays f32), split W_c weight.
    wpa = jnp.concatenate([params["wp"], params["wa"].T], axis=1).astype(jnp.float32)
    bp = params["bp"].reshape(1, h).astype(jnp.float32)
    wv = params["wv"].reshape(1, h).astype(jnp.float32)
    bv = params["bv"].reshape(1, 1).astype(jnp.float32)
    ba = params["ba"].reshape(1, h).astype(jnp.float32)
    wc1 = params["wc"][:h].astype(mm_dtype)       # ct projection
    wc2 = params["wc"][h:].astype(mm_dtype)       # ht projection
    bc = params["bc"].reshape(1, h).astype(jnp.float32)

    kernel = functools.partial(
        _local_attention_kernel,
        hidden=h, seq_len=S, full_hidden=H, context_size=context_size,
        rows=RB, out_pad=out_pad, approx_recip=approx_softmax, mm_dtype=mm_dtype,
    )

    def full_spec(shape):
        return pl.BlockSpec(shape, lambda i, _s=shape: tuple(0 for _ in _s))

    grid = (Rp // RB,)
    slab = pl.pallas_call(
        kernel,
        out_shape=jax.ShapeDtypeStruct((Rp, out_pad), jnp.float32),
        grid_spec=pltpu.PrefetchScalarGridSpec(
            num_scalar_prefetch=0,
            grid=grid,
            in_specs=[
                pl.BlockSpec((RB, h), lambda i: (i, 0)),
                pl.BlockSpec((RB, S, h), lambda i: (i, 0, 0)),
                full_spec((h, 2 * h)),
                full_spec((1, h)), full_spec((1, h)), full_spec((1, 1)),
                full_spec((1, h)),
                full_spec((h, h)), full_spec((h, h)), full_spec((1, h)),
            ],
            out_specs=pl.BlockSpec((RB, out_pad), lambda i: (i, 0)),
        ),
        compiler_params=pltpu.CompilerParams(
            # "parallel" row axis -> both v7x TensorCores get work at real sizes.
            dimension_semantics=("parallel",),
            # 48 MiB: under v7x's 64 MiB physical VMEM, plenty on v5e/v6e (128 MiB).
            vmem_limit_bytes=48 * 1024 * 1024,
        ),
    )(ht_rows, hs_rows, wpa, bp, wv, bv, ba, wc1, wc2, bc)

    c = slab[:R, :h].reshape(L, B, h)
    att = slab[:R, h:h + W].reshape(L, B, W)
    return c, att


def local_attention_reference(hs, ht, params, context_size):
    """Pure-JAX reference mirroring the PyTorch forward (pad + gather path)."""
    L, B, h = ht.shape
    _, S, H = hs.shape
    W = 2 * context_size + 1
    wp, bp = params["wp"], params["bp"]
    wv, bv = params["wv"], params["bv"]
    wa, ba = params["wa"], params["ba"]
    wc, bc = params["wc"], params["bc"]

    p = jnp.tanh(ht @ wp + bp)                                    # (L, B, h)
    pt = jax.nn.sigmoid(p @ wv[:, None] + bv) * S                 # (L, B, 1)
    widx = jnp.linspace(-context_size, context_size, W).astype(jnp.float32)
    positions = widx + pt.astype(jnp.int32).astype(jnp.float32)   # (L, B, W)
    kern = jnp.exp(-2.0 * ((positions - pt) / H) ** 2)[:, :, None, :]

    hs4 = hs.reshape(B, S, L, h).transpose(2, 0, 1, 3)            # (L, B, S, h)
    hs_pad = jnp.pad(hs4, ((0, 0), (0, 0), (context_size, context_size), (0, 0)))
    idx = (positions.astype(jnp.int32) + context_size)[..., None]  # (L, B, W, 1)
    hs_sub = jnp.take_along_axis(hs_pad, idx, axis=2)              # (L, B, W, h)

    c_a = hs_sub @ wa + ba                                         # (L, B, W, h)
    scores = jnp.einsum("lbh,lbwh->lbw", ht, c_a)[:, :, None, :]   # (L, B, 1, W)
    attn = jax.nn.softmax(scores, axis=-1) * kern                  # (L, B, 1, W)
    ct = jnp.einsum("lbow,lbwh->lboh", attn, hs_sub)[:, :, 0, :]   # (L, B, h)
    out = jnp.tanh(jnp.concatenate([ct, ht], axis=-1) @ wc + bc)   # (L, B, h)
    return out, attn[:, :, 0, :]


def make_params(key, latent_dim):
    ks = jax.random.split(key, 8)
    s1 = 1.0 / np.sqrt(latent_dim)
    s2 = 1.0 / np.sqrt(2 * latent_dim)
    u = lambda k, shape, s: jax.random.uniform(k, shape, jnp.float32, -s, s)
    return dict(
        wp=u(ks[0], (latent_dim, latent_dim), s1),      # position_weight (in, out)
        bp=u(ks[1], (latent_dim,), s1),
        wv=u(ks[2], (latent_dim,), s1),                 # v_p weight (out dim is 1)
        bv=u(ks[3], (), s1),
        wa=u(ks[4], (latent_dim, latent_dim), s1),      # attention_weight (in, out)
        ba=u(ks[5], (latent_dim,), s1),
        wc=u(ks[6], (2 * latent_dim, latent_dim), s2),  # context_weight (in, out)
        bc=u(ks[7], (latent_dim,), s2),
    )


if __name__ == "__main__":
    latent_dim = 32          # h
    num_layers = 2
    bidirectional = True
    context_size = 2         # window = 5
    L = (2 if bidirectional else 1) * num_layers      # 4
    B, S = 2, 8
    H = L * latent_dim       # hs hidden dim = 128 (lane-aligned)

    key = jax.random.PRNGKey(0)
    k_hs, k_ht, k_par = jax.random.split(key, 3)
    hs = jax.random.normal(k_hs, (B, S, H), jnp.float32)           # (B, S, L*h)
    ht = jax.random.normal(k_ht, (L, B, latent_dim), jnp.float32)  # (L, B, h)
    params = make_params(k_par, latent_dim)

    c_ref, att_ref = local_attention_reference(hs, ht, params, context_size)

    # Exact f32 path: tight parity with the PyTorch-equivalent reference.
    c, att = jax.block_until_ready(
        local_attention_forward(hs, ht, params, context_size)
    )
    assert c.shape == (L, B, latent_dim)
    assert att.shape == (L, B, 2 * context_size + 1)
    np.testing.assert_allclose(np.asarray(c), np.asarray(c_ref), rtol=1e-4, atol=1e-4)
    np.testing.assert_allclose(np.asarray(att), np.asarray(att_ref), rtol=1e-4, atol=1e-4)

    # Production path: bf16 MXU matmuls (f32 accumulation + f32 position path) and
    # approx-EUP softmax reciprocal; checked loosely against the f32 reference.
    c16, att16 = jax.block_until_ready(
        local_attention_forward(hs, ht, params, context_size,
                                use_bf16=True, approx_softmax=True)
    )
    np.testing.assert_allclose(np.asarray(c16), np.asarray(c_ref), rtol=0.0, atol=0.1)
    np.testing.assert_allclose(np.asarray(att16), np.asarray(att_ref), rtol=0.0, atol=0.1)

    print("KERNEL_OK")
</pallas_src>

<mosaic_0001>
module attributes {stable_mosaic.version = 11 : i64} {
  func.func @_local_attention_kernel(%arg0: i32, %arg1: memref<8x32xf32, #tpu.memory_space<vmem>>, %arg2: memref<8x8x32xf32, #tpu.memory_space<vmem>>, %arg3: memref<32x64xf32, #tpu.memory_space<vmem>>, %arg4: memref<1x32xf32, #tpu.memory_space<vmem>>, %arg5: memref<1x32xf32, #tpu.memory_space<vmem>>, %arg6: memref<1x1xf32, #tpu.memory_space<vmem>>, %arg7: memref<1x32xf32, #tpu.memory_space<vmem>>, %arg8: memref<32x32xf32, #tpu.memory_space<vmem>>, %arg9: memref<32x32xf32, #tpu.memory_space<vmem>>, %arg10: memref<1x32xf32, #tpu.memory_space<vmem>>, %arg11: memref<8x128xf32, #tpu.memory_space<vmem>>) attributes {dimension_semantics = [#tpu.dimension_semantics<parallel>], iteration_bounds = array<i64: 1>, scalar_prefetch = 0 : i64, scratch_operands = 0 : i64, tpu.core_type = #tpu.core_type<tc>, window_params = [{transform_indices = @transform_0, window_bounds = array<i64: 8, 32>}, {transform_indices = @transform_1, window_bounds = array<i64: 8, 8, 32>}, {pipeline_mode = #tpu.pipeline_mode<synchronous>, transform_indices = @transform_2, window_bounds = array<i64: 32, 64>}, {pipeline_mode = #tpu.pipeline_mode<synchronous>, transform_indices = @transform_3, window_bounds = array<i64: 1, 32>}, {pipeline_mode = #tpu.pipeline_mode<synchronous>, transform_indices = @transform_4, window_bounds = array<i64: 1, 32>}, {pipeline_mode = #tpu.pipeline_mode<synchronous>, transform_indices = @transform_5, window_bounds = array<i64: 1, 1>}, {pipeline_mode = #tpu.pipeline_mode<synchronous>, transform_indices = @transform_6, window_bounds = array<i64: 1, 32>}, {pipeline_mode = #tpu.pipeline_mode<synchronous>, transform_indices = @transform_7, window_bounds = array<i64: 32, 32>}, {pipeline_mode = #tpu.pipeline_mode<synchronous>, transform_indices = @transform_8, window_bounds = array<i64: 32, 32>}, {pipeline_mode = #tpu.pipeline_mode<synchronous>, transform_indices = @transform_9, window_bounds = array<i64: 1, 32>}, {transform_indices = @transform_10, window_bounds = array<i64: 8, 128>}]} {
    %c0 = arith.constant 0 : index
    %c0_0 = arith.constant 0 : index
    %0 = vector.load %arg1[%c0, %c0_0] : memref<8x32xf32, #tpu.memory_space<vmem>>, vector<8x32xf32>
    %c0_1 = arith.constant 0 : index
    %c0_2 = arith.constant 0 : index
    %c0_3 = arith.constant 0 : index
    %1 = vector.load %arg2[%c0_1, %c0_2, %c0_3] : memref<8x8x32xf32, #tpu.memory_space<vmem>>, vector<8x8x32xf32>
    %c0_4 = arith.constant 0 : index
    %c0_5 = arith.constant 0 : index
    %2 = vector.load %arg3[%c0_4, %c0_5] : memref<32x64xf32, #tpu.memory_space<vmem>>, vector<32x64xf32>
    %cst = arith.constant dense<0.000000e+00> : vector<8x64xf32>
    %3 = tpu.matmul %0, %2, %cst {dimension_numbers = #tpu.dot_dimension_numbers<[1], [0], [0], [1], [0, 0, 1, 1], [], []>, precision = #tpu.contract_precision<fp32>} : vector<8x32xf32>, vector<32x64xf32>, vector<8x64xf32> -> vector<8x64xf32>
    %4 = vector.extract_strided_slice %3 {offsets = [0, 0], sizes = [8, 32], strides = [1, 1]} : vector<8x64xf32> to vector<8x32xf32>
    %c0_6 = arith.constant 0 : index
    %c0_7 = arith.constant 0 : index
    %5 = vector.load %arg4[%c0_6, %c0_7] : memref<1x32xf32, #tpu.memory_space<vmem>>, vector<1x32xf32>
    %6 = vector.broadcast %5 : vector<1x32xf32> to vector<8x32xf32>
    %7 = arith.addf %4, %6 : vector<8x32xf32>
    %8 = math.tanh %7 : vector<8x32xf32>
    %9 = vector.extract_strided_slice %3 {offsets = [0, 32], sizes = [8, 32], strides = [1, 1]} : vector<8x64xf32> to vector<8x32xf32>
    %c0_8 = arith.constant 0 : index
    %c0_9 = arith.constant 0 : index
    %10 = vector.load %arg5[%c0_8, %c0_9] : memref<1x32xf32, #tpu.memory_space<vmem>>, vector<1x32xf32>
    %11 = vector.broadcast %10 : vector<1x32xf32> to vector<8x32xf32>
    %12 = arith.mulf %8, %11 : vector<8x32xf32>
    %cst_10 = arith.constant dense<0.000000e+00> : vector<8xf32>
    %13 = vector.multi_reduction <add>, %12, %cst_10 [1] : vector<8x32xf32> to vector<8xf32>
    %14 = vector.shape_cast %13 : vector<8xf32> to vector<8x1xf32>
    %c0_11 = arith.constant 0 : index
    %c0_12 = arith.constant 0 : index
    %15 = vector.load %arg6[%c0_11, %c0_12] : memref<1x1xf32, #tpu.memory_space<vmem>>, vector<1x1xf32>
    %16 = vector.broadcast %15 : vector<1x1xf32> to vector<8x1xf32>
    %17 = arith.addf %14, %16 : vector<8x1xf32>
    %18 = arith.negf %17 : vector<8x1xf32>
    %19 = math.exp %18 : vector<8x1xf32>
    %cst_13 = arith.constant 1.000000e+00 : f32
    %20 = vector.broadcast %cst_13 : f32 to vector<8x1xf32>
    %21 = arith.addf %20, %19 : vector<8x1xf32>
    %22 = arith.divf %20, %21 : vector<8x1xf32>
    %cst_14 = arith.constant 8.000000e+00 : f32
    %23 = vector.broadcast %cst_14 : f32 to vector<8x1xf32>
    %24 = arith.mulf %22, %23 : vector<8x1xf32>
    %25 = arith.fptosi %24 : vector<8x1xf32> to vector<8x1xi32>
    %26 = tpu.iota {dimensions = array<i32: 1>} : vector<8x5xi32>
    %c2_i32 = arith.constant 2 : i32
    %27 = vector.broadcast %c2_i32 : i32 to vector<8x5xi32>
    %28 = arith.subi %26, %27 : vector<8x5xi32>
    %29 = vector.broadcast %25 : vector<8x1xi32> to vector<8x5xi32>
    %30 = arith.addi %29, %28 : vector<8x5xi32>
    %31 = arith.sitofp %30 : vector<8x5xi32> to vector<8x5xf32>
    %32 = vector.broadcast %24 : vector<8x1xf32> to vector<8x5xf32>
    %33 = arith.subf %31, %32 : vector<8x5xf32>
    %cst_15 = arith.constant 1.280000e+02 : f32
    %34 = vector.broadcast %cst_15 : f32 to vector<8x5xf32>
    %35 = arith.divf %33, %34 : vector<8x5xf32>
    %cst_16 = arith.constant -2.000000e+00 : f32
    %36 = vector.broadcast %cst_16 : f32 to vector<8x5xf32>
    %37 = arith.mulf %36, %35 : vector<8x5xf32>
    %38 = arith.mulf %37, %35 : vector<8x5xf32>
    %39 = math.exp %38 : vector<8x5xf32>
    %40 = tpu.iota {dimensions = array<i32: 1>} : vector<8x5x8xi32>
    %c2_i32_17 = arith.constant 2 : i32
    %41 = vector.broadcast %c2_i32_17 : i32 to vector<8x5x8xi32>
    %42 = arith.subi %40, %41 : vector<8x5x8xi32>
    %43 = tpu.iota {dimensions = array<i32: 2>} : vector<8x5x8xi32>
    %44 = vector.shape_cast %25 : vector<8x1xi32> to vector<8x1x1xi32>
    %45 = vector.broadcast %44 : vector<8x1x1xi32> to vector<8x5x8xi32>
    %46 = arith.addi %45, %42 : vector<8x5x8xi32>
    %47 = arith.cmpi eq, %43, %46 : vector<8x5x8xi32>
    %48 = arith.extui %47 : vector<8x5x8xi1> to vector<8x5x8xi32>
    %49 = arith.sitofp %48 : vector<8x5x8xi32> to vector<8x5x8xf32>
    %cst_18 = arith.constant dense<0.000000e+00> : vector<8x5x32xf32>
    %50 = tpu.matmul %49, %1, %cst_18 {dimension_numbers = #tpu.dot_dimension_numbers<[2], [1], [1], [2], [0, 0, 0, 1, 1, 2], [0], [0]>, precision = #tpu.contract_precision<fp32>} : vector<8x5x8xf32>, vector<8x8x32xf32>, vector<8x5x32xf32> -> vector<8x5x32xf32>
    %c0_19 = arith.constant 0 : index
    %c0_20 = arith.constant 0 : index
    %51 = vector.load %arg7[%c0_19, %c0_20] : memref<1x32xf32, #tpu.memory_space<vmem>>, vector<1x32xf32>
    %52 = vector.broadcast %51 : vector<1x32xf32> to vector<8x32xf32>
    %53 = arith.mulf %0, %52 : vector<8x32xf32>
    %cst_21 = arith.constant dense<0.000000e+00> : vector<8xf32>
    %54 = vector.multi_reduction <add>, %53, %cst_21 [1] : vector<8x32xf32> to vector<8xf32>
    %55 = vector.shape_cast %54 : vector<8xf32> to vector<8x1xf32>
    %56 = vector.shape_cast %9 : vector<8x32xf32> to vector<8x1x32xf32>
    %57 = vector.broadcast %56 : vector<8x1x32xf32> to vector<8x5x32xf32>
    %58 = arith.mulf %57, %50 : vector<8x5x32xf32>
    %cst_22 = arith.constant dense<0.000000e+00> : vector<8x5xf32>
    %59 = vector.multi_reduction <add>, %58, %cst_22 [2] : vector<8x5x32xf32> to vector<8x5xf32>
    %60 = vector.broadcast %55 : vector<8x1xf32> to vector<8x5xf32>
    %61 = arith.addf %59, %60 : vector<8x5xf32>
    %cst_23 = arith.constant dense<0xFF800000> : vector<8xf32>
    %62 = vector.multi_reduction <maximumf>, %61, %cst_23 [1] : vector<8x5xf32> to vector<8xf32>
    %63 = vector.shape_cast %62 : vector<8xf32> to vector<8x1xf32>
    %64 = vector.broadcast %63 : vector<8x1xf32> to vector<8x5xf32>
    %65 = arith.subf %61, %64 : vector<8x5xf32>
    %66 = math.exp %65 : vector<8x5xf32>
    %cst_24 = arith.constant dense<0.000000e+00> : vector<8xf32>
    %67 = vector.multi_reduction <add>, %66, %cst_24 [1] : vector<8x5xf32> to vector<8xf32>
    %68 = vector.shape_cast %67 : vector<8xf32> to vector<8x1xf32>
    %69 = vector.broadcast %68 : vector<8x1xf32> to vector<8x5xf32>
    %70 = arith.divf %66, %69 : vector<8x5xf32>
    %71 = arith.mulf %70, %39 : vector<8x5xf32>
    %72 = vector.shape_cast %71 : vector<8x5xf32> to vector<8x5x1xf32>
    %73 = vector.broadcast %72 : vector<8x5x1xf32> to vector<8x5x32xf32>
    %74 = arith.mulf %73, %50 : vector<8x5x32xf32>
    %cst_25 = arith.constant dense<0.000000e+00> : vector<8x32xf32>
    %75 = vector.multi_reduction <add>, %74, %cst_25 [1] : vector<8x5x32xf32> to vector<8x32xf32>
    %c0_26 = arith.constant 0 : index
    %c0_27 = arith.constant 0 : index
    %76 = vector.load %arg8[%c0_26, %c0_27] : memref<32x32xf32, #tpu.memory_space<vmem>>, vector<32x32xf32>
    %cst_28 = arith.constant dense<0.000000e+00> : vector<8x32xf32>
    %77 = tpu.matmul %75, %76, %cst_28 {dimension_numbers = #tpu.dot_dimension_numbers<[1], [0], [0], [1], [0, 0, 1, 1], [], []>, precision = #tpu.contract_precision<fp32>} : vector<8x32xf32>, vector<32x32xf32>, vector<8x32xf32> -> vector<8x32xf32>
    %c0_29 = arith.constant 0 : index
    %c0_30 = arith.constant 0 : index
    %78 = vector.load %arg9[%c0_29, %c0_30] : memref<32x32xf32, #tpu.memory_space<vmem>>, vector<32x32xf32>
    %cst_31 = arith.constant dense<0.000000e+00> : vector<8x32xf32>
    %79 = tpu.matmul %0, %78, %cst_31 {dimension_numbers = #tpu.dot_dimension_numbers<[1], [0], [0], [1], [0, 0, 1, 1], [], []>, precision = #tpu.contract_precision<fp32>} : vector<8x32xf32>, vector<32x32xf32>, vector<8x32xf32> -> vector<8x32xf32>
    %80 = arith.addf %77, %79 : vector<8x32xf32>
    %c0_32 = arith.constant 0 : index
    %c0_33 = arith.constant 0 : index
    %81 = vector.load %arg10[%c0_32, %c0_33] : memref<1x32xf32, #tpu.memory_space<vmem>>, vector<1x32xf32>
    %82 = vector.broadcast %81 : vector<1x32xf32> to vector<8x32xf32>
    %83 = arith.addf %80, %82 : vector<8x32xf32>
    %84 = math.tanh %83 : vector<8x32xf32>
    %cst_34 = arith.constant 0.000000e+00 : f32
    %85 = vector.broadcast %cst_34 : f32 to vector<8x91xf32>
    %86 = tpu.concatenate %84, %71, %85 in 1 : vector<8x32xf32>, vector<8x5xf32>, vector<8x91xf32> -> vector<8x128xf32>
    %c0_35 = arith.constant 0 : index
    %c0_36 = arith.constant 0 : index
    %87 = vector.load %arg11[%c0_35, %c0_36] : memref<8x128xf32, #tpu.memory_space<vmem>>, vector<8x128xf32>
    tpu.vector_store %arg11[%c0_35, %c0_36], %86 {strides = array<i32>} : memref<8x128xf32, #tpu.memory_space<vmem>>, vector<8x128xf32>,
    return
  }
  func.func @transform_0(%arg0: i32) -> (i32, i32) {
    %c0_i32 = arith.constant 0 : i32
    %c0_i32_0 = arith.constant 0 : i32
    return %arg0, %c0_i32 : i32, i32
  }
  func.func @transform_1(%arg0: i32) -> (i32, i32, i32) {
    %c0_i32 = arith.constant 0 : i32
    %c0_i32_0 = arith.constant 0 : i32
    %c0_i32_1 = arith.constant 0 : i32
    return %arg0, %c0_i32, %c0_i32_0 : i32, i32, i32
  }
  func.func @transform_2(%arg0: i32) -> (i32, i32) {
    %c0_i32 = arith.constant 0 : i32
    %c0_i32_0 = arith.constant 0 : i32
    %c0_i32_1 = arith.constant 0 : i32
    return %c0_i32, %c0_i32_0 : i32, i32
  }
  func.func @transform_3(%arg0: i32) -> (i32, i32) {
    %c0_i32 = arith.constant 0 : i32
    %c0_i32_0 = arith.constant 0 : i32
    %c0_i32_1 = arith.constant 0 : i32
    return %c0_i32, %c0_i32_0 : i32, i32
  }
  func.func @transform_4(%arg0: i32) -> (i32, i32) {
    %c0_i32 = arith.constant 0 : i32
    %c0_i32_0 = arith.constant 0 : i32
    %c0_i32_1 = arith.constant 0 : i32
    return %c0_i32, %c0_i32_0 : i32, i32
  }
  func.func @transform_5(%arg0: i32) -> (i32, i32) {
    %c0_i32 = arith.constant 0 : i32
    %c0_i32_0 = arith.constant 0 : i32
    %c0_i32_1 = arith.constant 0 : i32
    return %c0_i32, %c0_i32_0 : i32, i32
  }
  func.func @transform_6(%arg0: i32) -> (i32, i32) {
    %c0_i32 = arith.constant 0 : i32
    %c0_i32_0 = arith.constant 0 : i32
    %c0_i32_1 = arith.constant 0 : i32
    return %c0_i32, %c0_i32_0 : i32, i32
  }
  func.func @transform_7(%arg0: i32) -> (i32, i32) {
    %c0_i32 = arith.constant 0 : i32
    %c0_i32_0 = arith.constant 0 : i32
    %c0_i32_1 = arith.constant 0 : i32
    return %c0_i32, %c0_i32_0 : i32, i32
  }
  func.func @transform_8(%arg0: i32) -> (i32, i32) {
    %c0_i32 = arith.constant 0 : i32
    %c0_i32_0 = arith.constant 0 : i32
    %c0_i32_1 = arith.constant 0 : i32
    return %c0_i32, %c0_i32_0 : i32, i32
  }
  func.func @transform_9(%arg0: i32) -> (i32, i32) {
    %c0_i32 = arith.constant 0 : i32
    %c0_i32_0 = arith.constant 0 : i32
    %c0_i32_1 = arith.constant 0 : i32
    return %c0_i32, %c0_i32_0 : i32, i32
  }
  func.func @transform_10(%arg0: i32) -> (i32, i32) {
    %c0_i32 = arith.constant 0 : i32
    %c0_i32_0 = arith.constant 0 : i32
    return %arg0, %c0_i32 : i32, i32
  }
}

</mosaic_0001>

<bundles_post_ra>
// kernel: tpu_custom_call.1
= control target key start
LH: loop header
LB: loop body
LE: loop exit
PB: predicated region body
PF: predicated region fallthrough
CT: control target
= control target key end

     0   :  { %s8209_s0 = inlined_call_operand.hbm [shape: f32[8,32], index: 0, kind: input, shape index: {}]   ;;  %s8210_s1 = inlined_call_operand.hbm [shape: f32[8,8,32], index: 1, kind: input, shape index: {}]   ;;  %s8211_s2 = inlined_call_operand.hbm [shape: f32[32,64], index: 2, kind: input, shape index: {}]   ;;  %s8212_s3 = inlined_call_operand.vmem [shape: f32[1,32], index: 3, kind: input, shape index: {}]   ;;  %s8213_s4 = inlined_call_operand.vmem [shape: f32[1,32], index: 4, kind: input, shape index: {}]   ;;  %s8214_s5 = inlined_call_operand.<no memory space> [shape: f32[1,1], index: 5, kind: input, shape index: {}]   ;;  %s8215_s6 = inlined_call_operand.vmem [shape: f32[1,32], index: 6, kind: input, shape index: {}]   ;;  %s8216_s7 = inlined_call_operand.hbm [shape: f32[32,32], index: 7, kind: input, shape index: {}]   ;;  %s8217_s8 = inlined_call_operand.hbm [shape: f32[32,32], index: 8, kind: input, shape index: {}]   ;;  %s8218_s9 = inlined_call_operand.vmem [shape: f32[1,32], index: 9, kind: input, shape index: {}]   ;;  %s8219_s10 = inlined_call_operand.hbm [shape: f32[8,128], index: 10, kind: output, shape index: {}]  }
   0x1   :  { %v15_v0 = vstv %s8214_s5 }
   0x2   :  { %16 = vst [vmem:[#allocation2] sm:$0x1] %v15_v0 }
   0x3   :  { %17 = vsyncpa [#allocation4], 0 }
   0x4   :  { %18 = vsyncpa [#allocation7], 0 }
   0x5   :  { %19 = vsyncpa [#allocation10], 0 }
   0x6   :  { %20 = vsyncpa [#allocation5], 0  ;;  %s7229_s15 = smov [#allocation6]   ;;  %s7089_s19 = scalar_lea.hbm %s8210_s1, 1024 }
   0x7   :  { %s36_s16 = sshll.u32 %s7229_s15, 4  ;;  %p7090_p0 = scmp.ne.s32.totalorder %s8210_s1, %s7089_s19  ;;  %s37_s16 = int_to_ptr.vmem [resolvable:$true] %s36_s16 }
   0x8   :  { %p7093_p1 = scmp.lt.u32.totalorder %s7089_s19, %s8210_s1 }
   0xa   :  { %p7095_p2 = pnand %p7093_p1, %p7090_p0 }
   0xc   :  { %7098 = shalt.err (!%p7095_p2)
}
   0xd   :  { %s7099_s5 = scalar_lea.vmem %s37_s16, 1024  ;;  %p7104_p4 = scmp.lt.s32.totalorder %s37_s16, %s37_s16 }
   0xe   :  { %p7100_p3 = scmp.ne.s32.totalorder %s37_s16, %s7099_s5  ;;  %p7105_p5 = scmp.lt.s32.totalorder %s7099_s5, %s7099_s5 }
  0x10   :  { %p7106_p6 = por %p7105_p5, %p7104_p4 }
  0x12   :  { %p7107_p7 = pnand %p7106_p6, %p7100_p3 }
  0x14   :  { %7110 = shalt.err (!%p7107_p7)
}
  0x15   :  { %s7230_s24 = smov 128   ;;  %s7231_s25 = smov 8  }
  0x16   :  { %42 = dma.hbm_to_vmem [thread:$0]  %s8210_s1, 1024, %s37_s16, [#allocation7], %s7230_s24, %s7230_s24, %s7231_s25  }
  0x17   :  { %s7232_s28 = smov [#allocation9]   ;;  %s7233_s30 = smov [#allocation3]  }
  0x18   :  { %s68_s29 = sshll.u32 %s7232_s28, 4  ;;  %s27_s11 = sshll.u32 %s7233_s30, 4  ;;  %s69_s29 = int_to_ptr.vmem [resolvable:$true] %s68_s29  ;;  %s28_s11 = int_to_ptr.vmem [resolvable:$true] %s27_s11 }
  0x19   :  { %s7111_s14 = scalar_lea.hbm %s8216_s7, 512 }
  0x1a   :  { %p7112_p8 = scmp.ne.s32.totalorder %s8216_s7, %s7111_s14  ;;  %p7115_p9 = scmp.lt.u32.totalorder %s7111_s14, %s8216_s7 }
  0x1c   :  { %p7117_p10 = pnand %p7115_p9, %p7112_p8 }
  0x1e   :  { %7120 = shalt.err (!%p7117_p10)
}
  0x1f   :  { %s7121_s1 = scalar_lea.vmem %s69_s29, 512  ;;  %p7126_p12 = scmp.lt.s32.totalorder %s69_s29, %s69_s29 }
  0x20   :  { %p7122_p11 = scmp.ne.s32.totalorder %s69_s29, %s7121_s1  ;;  %p7127_p13 = scmp.lt.s32.totalorder %s7121_s1, %s7121_s1 }
  0x22   :  { %p7128_p0 = por %p7127_p13, %p7126_p12 }
  0x24   :  { %p7129_p1 = pnand %p7128_p0, %p7122_p11 }
  0x26   :  { %7132 = shalt.err (!%p7129_p1)
}
  0x27   :  { %74 = dma.hbm_to_vmem [thread:$0]  %s8216_s7, 512, %s69_s29, [#allocation10], %s7230_s24, %s7230_s24, %s7231_s25  }
  0x28   :  { %s7133_s23 = scalar_lea.hbm %s8209_s0, 128 }
  0x29   :  { %p7134_p2 = scmp.ne.s32.totalorder %s8209_s0, %s7133_s23  ;;  %p7137_p3 = scmp.lt.u32.totalorder %s7133_s23, %s8209_s0 }
  0x2b   :  { %p7139_p4 = pnand %p7137_p3, %p7134_p2 }
  0x2d   :  { %7142 = shalt.err (!%p7139_p4)
}
  0x2e   :  { %s7143_s30 = scalar_lea.vmem %s28_s11, 128  ;;  %p7148_p6 = scmp.lt.s32.totalorder %s28_s11, %s28_s11 }
  0x2f   :  { %p7144_p5 = scmp.ne.s32.totalorder %s28_s11, %s7143_s30  ;;  %p7149_p7 = scmp.lt.s32.totalorder %s7143_s30, %s7143_s30 }
  0x31   :  { %p7150_p8 = por %p7149_p7, %p7148_p6 }
  0x33   :  { %p7151_p9 = pnand %p7150_p8, %p7144_p5 }
  0x35   :  { %7154 = shalt.err (!%p7151_p9)
}
  0x36   :  { %30 = dma.hbm_to_vmem [thread:$0]  %s8209_s0, 128, %s28_s11, [#allocation4]  }
  0x37   :  { %s7234_s12 = smov [#allocation8]   ;;  %s7235_s14 = smov [#allocation11]  }
  0x38   :  { %s48_s13 = sshll.u32 %s7234_s12, 4  ;;  %s80_s15 = sshll.u32 %s7235_s14, 4  ;;  %s49_s13 = int_to_ptr.vmem [resolvable:$true] %s48_s13  ;;  %s81_s15 = int_to_ptr.vmem [resolvable:$true] %s80_s15 }
  0x39   :  { %s7155_s19 = scalar_lea.hbm %s8211_s2, 512 }
  0x3a   :  { %p7156_p10 = scmp.ne.s32.totalorder %s8211_s2, %s7155_s19  ;;  %p7159_p11 = scmp.lt.u32.totalorder %s7155_s19, %s8211_s2 }
  0x3c   :  { %p7161_p12 = pnand %p7159_p11, %p7156_p10 }
  0x3e   :  { %7164 = shalt.err (!%p7161_p12)
}
  0x3f   :  { %s7165_s0 = scalar_lea.vmem %s49_s13, 512  ;;  %p7170_p0 = scmp.lt.s32.totalorder %s49_s13, %s49_s13 }
  0x40   :  { %p7166_p13 = scmp.ne.s32.totalorder %s49_s13, %s7165_s0  ;;  %p7171_p1 = scmp.lt.s32.totalorder %s7165_s0, %s7165_s0 }
  0x42   :  { %p7172_p2 = por %p7171_p1, %p7170_p0 }
  0x44   :  { %p7173_p3 = pnand %p7172_p2, %p7166_p13 }
  0x46   :  { %7176 = shalt.err (!%p7173_p3)
}
  0x47   :  { %54 = dma.hbm_to_vmem [thread:$0]  %s8211_s2, 512, %s49_s13, [#allocation7], %s7230_s24, %s7230_s24, %s7231_s25  }
  0x48   :  { %s7177_s26 = scalar_lea.hbm %s8217_s8, 512 }
  0x49   :  { %p7178_p4 = scmp.ne.s32.totalorder %s8217_s8, %s7177_s26  ;;  %p7181_p5 = scmp.lt.u32.totalorder %s7177_s26, %s8217_s8 }
  0x4b   :  { %p7183_p6 = pnand %p7181_p5, %p7178_p4 }
  0x4d   :  { %7186 = shalt.err (!%p7183_p6)
}
  0x4e   :  { %s7187_s29 = scalar_lea.vmem %s81_s15, 512  ;;  %p7192_p8 = scmp.lt.s32.totalorder %s81_s15, %s81_s15 }
  0x4f   :  { %p7188_p7 = scmp.ne.s32.totalorder %s81_s15, %s7187_s29  ;;  %p7193_p9 = scmp.lt.s32.totalorder %s7187_s29, %s7187_s29 }
  0x51   :  { %p7194_p10 = por %p7193_p9, %p7192_p8 }
  0x53   :  { %p7195_p11 = pnand %p7194_p10, %p7188_p7 }
  0x55   :  { %7198 = shalt.err (!%p7195_p11)
}
  0x56   :  { %86 = dma.hbm_to_vmem [thread:$0]  %s8217_s8, 512, %s81_s15, [#allocation10], %s7230_s24, %s7230_s24, %s7231_s25  }
  0x57   :  { %7221 = dma.done.wait [#allocation4], 128  }
  0x58   :  { %7222 = vsyncadd [#allocation4], 4294967168 }
  0x59   :  { %7223 = dma.done.wait [#allocation7], 1536  }
  0x5a   :  { %7224 = vsyncadd [#allocation7], 4294965760 }
  0x5b   :  { %7225 = dma.done.wait [#allocation10], 1024  }
  0x5c   :  { %7226 = vsyncadd [#allocation10], 4294966272  ;;  %v7236_v1 = vmov 0.0|0.0   ;;  %vm7237_vm0 = vmmov 0   ;;  %v7238_v2 = vmov 0.0   ;;  %vm117_vm1 = vcmask 261120  }
  0x5d   :  { %6829 = vmatprep.subr.bf16.mxu0 %v7236_v1  ;;  %6399 = vmatprep.mubr.msk.f32.mxu0 %vm7237_vm0, %v7238_v2  ;;  %v113_v3 = vld [vmem:[#allocation8] sm:$0xff]  ;;  %v114_v4 = vld [vmem:[#allocation8 + $0x8] sm:$0xff]  ;;  %v115_v5 = vld [vmem:[#allocation8 + $0x10] sm:$0xff]  ;;  %v7239_v50 = vmov 0   ;;  %v642_v57 = vlaneseq  ;;  %v7240_v58 = vmov 1966171168  }
  0x5e   :  { %6457 = vmatprep.subr.mxu1 %v7238_v2  ;;  %6459 = vmatprep.mubr.msk.f32.mxu1 %vm7237_vm0, %v7238_v2  ;;  %v122_v6 = vand.u32 4294901760, %v113_v3  ;;  %v125_v7 = vand.u32 4294901760, %v114_v4  ;;  %v116_v8 = vld [vmem:[#allocation8 + $0x18] sm:$0xff]  ;;  %v128_v9 = vand.u32 4294901760, %v115_v5  ;;  %v6165_v42 = vld [vmem:[%s8212_s3] ss:$0 sm:$0xff]  ;;  %v667_v59 = vunpack.c.l.s4 %v7240_v58 }
  0x5f   :  { %v104_v10 = vld [vmem:[#allocation3] sm:$0xff]  ;;  %v131_v11 = vand.u32 4294901760, %v116_v8  ;;  %v6166_v46 = vld [vmem:[%s8213_s4] ss:$0 sm:$0xff]  ;;  %7044 = vset.pattern.permute.xlu0 %v7239_v50  ;;  %7045 = vset.pattern.permute.xlu1 %v7239_v50  ;;  %v7433_v61 = vshrl.u32 %v642_v57, 7  ;;  %vm802_vm2 = vcmask 64512  }
  0x60   :  { %v119_v12 = vsel %vm117_vm1, %v104_v10, 0  ;;  %v6830_v13 = vpack.c.bf16 %v125_v7, %v122_v6  ;;  %v202_v14 = vsub.f32 %v113_v3, %v122_v6  ;;  %v209_v15 = vsub.f32 %v114_v4, %v125_v7  ;;  %v6167_v51 = vld [vmem:[#allocation2] ss:$0 sm:$0xff]  ;;  %s7241_s3 = smov 32   ;;  %s7242_s4 = smov 96  }
  0x61   :  { %v216_v16 = vsub.f32 %v115_v5, %v128_v9  ;;  %v223_v17 = vsub.f32 %v116_v8, %v131_v11  ;;  %v7381_v18 = vand.u32 4294901760, %v119_v12  ;;  %v6833_v19 = vpack.c.bf16 %v131_v11, %v128_v9  ;;  %s7243_s18 = smov [#allocation12]  }
  0x62   :  { %6831 = vmatpush3.bf16.msra.mxu0 %v6830_v13  ;;  %v203_v20 = vand.u32 4294901760, %v202_v14  ;;  %v210_v21 = vand.u32 4294901760, %v209_v15  ;;  %v6842_v38 = vpack.c.bf16 %v209_v15, %v202_v14  ;;  %v668_v62 = vunpack.c.0.s8 %v667_v59  ;;  %s6154_s19 = sshll.u32 %s7243_s18, 4  ;;  %s6155_s19 = int_to_ptr.vmem [resolvable:$true] %s6154_s19 }
  0x63   :  { %v217_v22 = vand.u32 4294901760, %v216_v16  ;;  %6832 = vmatprep.subr.bf16.mxu0 %v7236_v1  ;;  %v7385_v23 = vsub.f32 %v119_v12, %v7381_v18  ;;  %v224_v24 = vand.u32 4294901760, %v223_v17  ;;  %v6845_v39 = vpack.c.bf16 %v223_v17, %v216_v16  ;;  %s7199_s1 = scalar_lea.vmem %s6155_s19, 128  ;;  %p7204_p13 = scmp.lt.s32.totalorder %s6155_s19, %s6155_s19 }
  0x64   :  { %v204_v25 = vsub.f32 %v202_v14, %v203_v20  ;;  %v211_v26 = vsub.f32 %v209_v15, %v210_v21  ;;  %v6854_v40 = vpack.c.bf16 %v210_v21, %v203_v20  ;;  %v7439_v3 = vsub.s32 %v668_v62, %v7433_v61  ;;  %v105_v21 = vld [vmem:[#allocation6] sm:$0xff]  ;;  %p7200_p12 = scmp.ne.s32.totalorder %s6155_s19, %s7199_s1  ;;  %p7205_p0 = scmp.lt.s32.totalorder %s7199_s1, %s7199_s1 }
  0x65   :  { %v218_v27 = vsub.f32 %v216_v16, %v217_v22  ;;  %v7388_v28 = vand.u32 4294901760, %v7385_v23  ;;  %v225_v29 = vsub.f32 %v223_v17, %v224_v24  ;;  %v6857_v41 = vpack.c.bf16 %v224_v24, %v217_v22 }
  0x66   :  { %6834 = vmatpush3.bf16.msra.mxu0 %v6833_v19  ;;  %v205_v30 = vand.u32 4294901760, %v204_v25  ;;  %v212_v31 = vand.u32 4294901760, %v211_v26  ;;  %v7447_v7 = vsub.s32 0, %v7433_v61  ;;  %v7458_v22 = vand.u32 4294901760, %v105_v21  ;;  %p7206_p1 = por %p7205_p0, %p7204_p13 }
  0x67   :  { %v193_v32 = vsub.f32 %v7385_v23, %v7388_v28  ;;  %6835 = vmatprep.subr.bf16.mxu0 %v7236_v1  ;;  %v219_v34 = vand.u32 4294901760, %v218_v27  ;;  %v226_v35 = vand.u32 4294901760, %v225_v29  ;;  %vm4568_vm11 = vcmask 258048  }
  0x68   :  { %v6836_v33 = vpack.c.bf16 %v212_v31, %v205_v30  ;;  %6458 = vmatpush3.msra.mxu1 %v7458_v22  ;;  %v108_v31 = vld [vmem:[#allocation6 + $0x18] sm:$0xff]  ;;  %vm4706_vm12 = vcmask 1041409   ;;  %vm4708_vm13 = vcmask 1042434   ;;  %vm4710_vm14 = vcmask 1043459   ;;  %p7207_p2 = pnand %p7206_p1, %p7200_p12 }
  0x69   :  { %v7393_v36 = vand.u32 4294901760, %v193_v32  ;;  %v6839_v37 = vpack.c.bf16 %v226_v35, %v219_v34  ;;  %6462 = vmatprep.subr.mxu1 %v7238_v2  ;;  %v7466_v32 = vand.u32 4294901760, %v108_v31  ;;  %v7472_v34 = vadd.s32 4294967294, %v7433_v61 }
  0x6a   :  { %v7474_v35 = vand.u32 127, %v642_v57  ;;  %vm4712_vm15 = vcmask 1044484  }
  0x6b   :  { %6400 = vmatmul.mubr.f32.vlgmr.msra.gmra.mrb[0].mxu0 %v7393_v36  ;;  %v7488_v50 = vsub.f32 %v108_v31, %v7466_v32 }
  0x6c   :  { %6837 = vmatpush3.bf16.msra.mxu0 %v6836_v33  ;;  %6410 = vmatprep.mubr.msk.f32.mxu0 %vm7237_vm0, %v7238_v2 }
  0x6d   :  { %6838 = vmatprep.subr.bf16.mxu0 %v7236_v1 }
  0x70   :  { %6840 = vmatpush3.bf16.msra.mxu0 %v6839_v37  ;;  %v884_v37 = vsub.f32 %v105_v21, %v7458_v22 }
  0x71   :  { %6841 = vmatprep.subr.bf16.mxu0 %v7236_v1 }
  0x73   :  { %6411 = vmatmul.mubr.f32.vlgmr.msra.gmra.mrb[0].mxu0 %v7381_v18 }
  0x74   :  { %6843 = vmatpush3.bf16.msra.mxu0 %v6842_v38  ;;  %6421 = vmatprep.mubr.msk.f32.mxu0 %vm7237_vm0, %v7238_v2 }
  0x75   :  { %6844 = vmatprep.subr.bf16.mxu0 %v7236_v1 }
  0x78   :  { %6846 = vmatpush3.bf16.msra.mxu0 %v6845_v39 }
  0x79   :  { %6847 = vmatprep.subr.bf16.mxu0 %v7236_v1 }
  0x7b   :  { %6422 = vmatmul.mubr.f32.vlgmr.msra.gmra.mrb[0].mxu0 %v7385_v23 }
  0x7c   :  { %6849 = vmatpush3.bf16.msra.mxu0 %v6830_v13  ;;  %6432 = vmatprep.mubr.msk.f32.mxu0 %vm7237_vm0, %v7238_v2 }
  0x7d   :  { %6850 = vmatprep.subr.bf16.mxu0 %v7236_v1 }
  0x80   :  { %6852 = vmatpush3.bf16.msra.mxu0 %v6833_v19 }
  0x81   :  { %6853 = vmatprep.subr.bf16.mxu0 %v7236_v1 }
  0x83   :  { %6433 = vmatmul.mubr.f32.vlgmr.msra.gmra.mrb[0].mxu0 %v7388_v28 }
  0x84   :  { %6855 = vmatpush3.bf16.msra.mxu0 %v6854_v40  ;;  %6443 = vmatprep.mubr.msk.f32.mxu0 %vm7237_vm0, %v7238_v2 }
  0x85   :  { %6856 = vmatprep.subr.bf16.mxu0 %v7236_v1 }
  0x88   :  { %6858 = vmatpush3.bf16.msra.mxu0 %v6857_v41  ;;  %v885_v41 = vand.u32 4294901760, %v884_v37 }
  0x89   :  { %6859 = vmatprep.subr.bf16.mxu0 %v7236_v1 }
  0x8b   :  { %6444 = vmatmul.mubr.f32.vlgmr.msra.gmra.mrb[0].mxu0 %v7381_v18 }
  0x8c   :  { %6861 = vmatpush3.bf16.msra.mxu0 %v6830_v13  ;;  %6454 = vmatprep.mubr.msk.f32.mxu0 %vm7237_vm0, %v7238_v2 }
  0x8d   :  { %6862 = vmatprep.subr.bf16.mxu0 %v7236_v1 }
  0x90   :  { %6864 = vmatpush3.bf16.msra.mxu0 %v6833_v19 }
  0x91   :  { %6547 = vmatprep.subr.mxu0 %v7238_v2 }
  0x93   :  { %6455 = vmatmul.mubr.f32.vlgmr.msra.gmra.mrb[0].mxu0 %v7381_v18 }
  0x94   :  { %6549 = vmatprep.mubr.msk.f32.mxu0 %vm7237_vm0, %v7238_v2  ;;  %6548 = vmatpush3.msra.mxu0 %v7466_v32 }
  0x95   :  { %6552 = vmatprep.subr.mxu0 %v7238_v2 }
 0x166   :  { %v7426_v43 = vpop.f32.mrb[0].mxu0 }
 0x167   :  { %v613_v44 = vadd.f32 %v6165_v42, %v7426_v43  ;;  %v6456_v45 = vpop.f32.mrb[1].mxu0 }
 0x169   :  { %7046 = vtanh.f32 %v613_v44 }
 0x173   :  { %v7047_v47 = vpop.eup %7046 }
 0x174   :  { %v622_v48 = vmul.f32 %v7047_v47, %v6166_v46 }
 0x176   :  { %v623_v49 = vsel %vm117_vm1, %v622_v48, 0.0  ;;  %v886_v48 = vsub.f32 %v884_v37, %v885_v41 }
 0x177   :  { %624 = vadd.xlane.f32.xlu0 %v623_v49 }
 0x204   :  { %v625_v52 = vpop.xlane.xlu0 %624 }
 0x205   :  { %v633_v53 = vadd.f32 %v6167_v51, %v625_v52 }
 0x207   :  { %v6168_v54 = vmul.f32 -1.442695, %v633_v53 }
 0x209   :  { %7048 = vpow2.f32 %v6168_v54  ;;  %v887_v54 = vand.u32 4294901760, %v886_v48 }
 0x213   :  { %v7049_v55 = vpop.eup %7048 }
 0x214   :  { %v637_v56 = vadd.f32 1.0, %v7049_v55 }
 0x216   :  { %7050 = vrcp.f32 %v637_v56  ;;  %v2232_v56 = vand.u32 4294901760, %v7488_v50 }
 0x220   :  { %v7051_v60 = vpop.eup %7050 }
 0x221   :  { %v7435_v63 = vmul.f32 8.0, %v7051_v60 }
 0x223   :  { %v7027_v0 = vtrunc.f32 %v7435_v63 }
 0x225   :  { %v7441_v4 = vcvt.f32.s32 %v7027_v0  ;;  %v2233_v0 = vsub.f32 %v7488_v50, %v2232_v56 }
 0x227   :  { %v672_v5 = vrot.slane %v7441_v4, %v7439_v3  ;;  %v665_v13 = vcombine.high %v7441_v4, %v7441_v4 }
 0x229   :  { %v688_v6 = vrot.slane %v672_v5, %v7439_v3  ;;  %v680_v8 = vcombine.high %v672_v5, %v672_v5  ;;  %v679_v16 = vrot.slane %v665_v13, %v7439_v3 }
 0x22b   :  { %v717_v9 = vrot.slane %v688_v6, %v7447_v7  ;;  %v702_v10 = vrot.slane %v680_v8, %v7439_v3  ;;  %v710_v12 = vcombine.high %v688_v6, %v688_v6  ;;  %v695_v19 = vrot.slane %v679_v16, %v7439_v3 }
 0x22c   :  { %v681_v20 = vcombine.high %v679_v16, %v679_v16 }
 0x22d   :  { %747 = vperm.xlu0 %7044, %v717_v9   ;;  %v721_v11 = vrot.slane %v702_v10, %v7447_v7  ;;  %v712_v14 = vcombine.high %v702_v10, %v702_v10  ;;  %v725_v15 = vrot.slane %v710_v12, %v7447_v7  ;;  %v733_v24 = vrot.slane %v695_v19, %v7447_v7 }
 0x22e   :  { %v709_v25 = vrot.slane %v681_v20, %v7439_v3  ;;  %v711_v27 = vcombine.high %v695_v19, %v695_v19  ;;  %v2234_v9 = vand.u32 4294901760, %v2233_v0 }
 0x22f   :  { %750 = vperm.xlu1 %7045, %v721_v11   ;;  %v729_v17 = vrot.slane %v712_v14, %v7447_v7  ;;  %v106_v14 = vld [vmem:[#allocation6 + $0x8] sm:$0xff] }
 0x230   :  { %v737_v26 = vrot.slane %v709_v25, %v7447_v7  ;;  %v741_v29 = vrot.slane %v711_v27, %v7447_v7  ;;  %v713_v30 = vcombine.high %v709_v25, %v709_v25  ;;  %v7533_v16 = vand.u32 4294901760, %v106_v14 }
 0x232   :  { %v745_v33 = vrot.slane %v713_v30, %v7447_v7  ;;  %v7544_v20 = vsub.f32 %v106_v14, %v7533_v16 }
 0x233   :  { %753 = vperm.xlu1 %7045, %v725_v15  }
 0x234   :  { %v1334_v25 = vand.u32 4294901760, %v7544_v20 }
 0x236   :  { %v1335_v30 = vsub.f32 %v7544_v20, %v1334_v25 }
 0x237   :  { %756 = vperm.xlu1 %7045, %v729_v17  }
 0x23b   :  { %759 = vperm.xlu1 %7045, %v733_v24   ;;  %v110_v24 = vld [vmem:[#allocation6 + $0x28] sm:$0xff] }
 0x23f   :  { %762 = vperm.xlu1 %7045, %v737_v26  }
 0x243   :  { %765 = vperm.xlu1 %7045, %v741_v29   ;;  %v7562_v29 = vand.u32 4294901760, %v110_v24 }
 0x247   :  { %768 = vperm.xlu1 %7045, %v745_v33   ;;  %v7570_v33 = vsub.f32 %v110_v24, %v7562_v29 }
 0x2ac   :  { %v748_v38 = vpop.permute.xlu0 %747 }
 0x2ad   :  { %v770_v39 = vadd.s32 %v7472_v34, %v748_v38  ;;  %v1336_v38 = vand.u32 4294901760, %v1335_v30  ;;  %v111_v30 = vld [vmem:[#allocation6 + $0x30] sm:$0xff] }
 0x2ae   :  { %v751_v40 = vpop.permute.xlu1 %750 }
 0x2af   :  { %vm778_vm3 = vcmp.eq.s32.totalorder %v7474_v35, %v770_v39  ;;  %v771_v13 = vadd.s32 %v7472_v34, %v751_v40  ;;  %v3130_v40 = vand.u32 4294901760, %v7570_v33 }
 0x2b0   :  { %v7480_v42 = vsel %vm778_vm3, 1.0, %v7238_v2  ;;  %vm4716_vm3 = vcmask 1046534  }
 0x2b1   :  { %v804_v44 = vsel %vm802_vm2, %v7480_v42, 0  ;;  %vm779_vm5 = vcmp.eq.s32.totalorder %v7474_v35, %v771_v13 }
 0x2b2   :  { %v873_v45 = vsub.f32 %v804_v44, %v804_v44  ;;  %v754_v46 = vpop.permute.xlu1 %753  ;;  %v7529_v15 = vsel %vm779_vm5, 1.0, %v7238_v2  ;;  %vm4721_vm5 = vcmask 39936  }
 0x2b3   :  { %v7485_v47 = vadd.s32 %v7472_v34, %v754_v46  ;;  %v1253_v17 = vsel %vm802_vm2, %v7529_v15, 0  ;;  %v107_v46 = vld [vmem:[#allocation6 + $0x10] sm:$0xff] }
 0x2b4   :  { %v874_v49 = vand.u32 4294901760, %v873_v45  ;;  %v7546_v21 = vsub.f32 %v1253_v17, %v1253_v17 }
 0x2b5   :  { %vm780_vm7 = vcmp.eq.s32.totalorder %v7474_v35, %v7485_v47 }
 0x2b6   :  { %v757_v51 = vpop.permute.xlu1 %756  ;;  %v875_v52 = vsub.f32 %v873_v45, %v874_v49  ;;  %v1323_v27 = vand.u32 4294901760, %v7546_v21  ;;  %v7622_v48 = vsel %vm780_vm7, 1.0, %v7238_v2 }
 0x2b7   :  { %v773_v53 = vadd.s32 %v7472_v34, %v757_v51  ;;  %v1702_v51 = vsel %vm802_vm2, %v7622_v48, 0 }
 0x2b8   :  { %v876_v55 = vand.u32 4294901760, %v875_v52  ;;  %v1324_v31 = vsub.f32 %v7546_v21, %v1323_v27 }
 0x2b9   :  { %vm781_vm4 = vcmp.eq.s32.totalorder %v7474_v35, %v773_v53  ;;  %v7640_v53 = vsub.f32 %v1702_v51, %v1702_v51 }
 0x2ba   :  { %v7494_v57 = vsel %vm781_vm4, 1.0, %v7238_v2  ;;  %6460 = vmatmul.mubr.f32.vlgmr.msra.gmra.mrb[0].mxu1 %v876_v55  ;;  %v760_v58 = vpop.permute.xlu1 %759  ;;  %v1325_v39 = vand.u32 4294901760, %v1324_v31  ;;  %vm4718_vm4 = vcmask 1047559  }
 0x2bb   :  { %v2151_v59 = vsel %vm802_vm2, %v7494_v57, 0  ;;  %v7499_v60 = vadd.s32 %v7472_v34, %v760_v58  ;;  %6463 = vmatpush3.msra.mxu1 %v887_v54  ;;  %6464 = vmatprep.mubr.msk.f32.mxu1 %vm7237_vm0, %v7238_v2  ;;  %v112_v54 = vld [vmem:[#allocation6 + $0x38] sm:$0xff] }
 0x2bc   :  { %v2220_v62 = vsub.f32 %v2151_v59, %v2151_v59  ;;  %6467 = vmatprep.subr.mxu1 %v7238_v2 }
 0x2bd   :  { %vm782_vm9 = vcmp.eq.s32.totalorder %v7474_v35, %v7499_v60 }
 0x2be   :  { %v763_v5 = vpop.permute.xlu1 %762  ;;  %v2221_v6 = vand.u32 4294901760, %v2220_v62  ;;  %v7712_v17 = vsel %vm782_vm9, 1.0, %v7238_v2 }
 0x2bf   :  { %v775_v19 = vadd.s32 %v7472_v34, %v763_v5 }
 0x2c0   :  { %v2222_v8 = vsub.f32 %v2220_v62, %v2221_v6 }
 0x2c1   :  { %vm783_vm6 = vcmp.eq.s32.totalorder %v7474_v35, %v775_v19 }
 0x2c2   :  { %6465 = vmatmul.mubr.msk.f32.vlgmr.msra.gmra.mrb[0].mxu1 %vm802_vm2, %v7480_v42  ;;  %v766_v10 = vpop.permute.xlu1 %765  ;;  %v2223_v11 = vand.u32 4294901760, %v2222_v8  ;;  %v7556_v26 = vsel %vm783_vm6, 1.0, %v7238_v2 }
 0x2c3   :  { %v7508_v12 = vadd.s32 %v7472_v34, %v766_v10  ;;  %6468 = vmatpush3.msra.mxu1 %v884_v37  ;;  %6469 = vmatprep.mubr.msk.f32.mxu1 %vm7237_vm0, %v7238_v2 }
 0x2c4   :  { %6550 = vmatmul.mubr.f32.vlgmr.msra.gmra.mrb[2].mxu0 %v2223_v11  ;;  %6472 = vmatprep.subr.mxu1 %v7238_v2 }
 0x2c5   :  { %6553 = vmatpush3.msra.mxu0 %v2234_v9  ;;  %6554 = vmatprep.mubr.msk.f32.mxu0 %vm7237_vm0, %v7238_v2  ;;  %vm784_vm10 = vcmp.eq.s32.totalorder %v7474_v35, %v7508_v12 }
 0x2c6   :  { %6557 = vmatprep.subr.mxu0 %v7238_v2  ;;  %v6177_v31 = vsel %vm784_vm10, 1.0, %v7238_v2 }
 0x2ca   :  { %6470 = vmatmul.mubr.f32.vlgmr.msra.gmra.mrb[0].mxu1 %v873_v45 }
 0x2cb   :  { %6473 = vmatpush3.msra.mxu1 %v7458_v22  ;;  %6474 = vmatprep.mubr.msk.f32.mxu1 %vm7237_vm0, %v7238_v2 }
 0x2cc   :  { %6555 = vmatmul.mubr.msk.f32.vlgmr.msra.gmra.mrb[2].mxu0 %vm802_vm2, %v7494_v57  ;;  %6477 = vmatprep.subr.mxu1 %v7238_v2 }
 0x2cd   :  { %6558 = vmatpush3.msra.mxu0 %v7488_v50  ;;  %6559 = vmatprep.mubr.msk.f32.mxu0 %vm7237_vm0, %v7238_v2  ;;  %v7626_v50 = vand.u32 4294901760, %v107_v46 }
 0x2ce   :  { %6562 = vmatprep.subr.mxu0 %v7238_v2 }
 0x2cf   :  { %v7638_v52 = vsub.f32 %v107_v46, %v7626_v50 }
 0x2d2   :  { %6475 = vmatmul.mubr.f32.vlgmr.msra.gmra.mrb[0].mxu1 %v874_v49  ;;  %v769_v49 = vpop.permute.xlu1 %768 }
 0x2d3   :  { %6478 = vmatpush3.msra.mxu1 %v885_v41  ;;  %6479 = vmatprep.mubr.msk.f32.mxu1 %vm7237_vm0, %v7238_v2  ;;  %v777_v47 = vadd.s32 %v7472_v34, %v769_v49  ;;  %v1783_v34 = vand.u32 4294901760, %v7638_v52 }
 0x2d4   :  { %6560 = vmatmul.mubr.f32.vlgmr.msra.gmra.mrb[2].mxu0 %v2220_v62  ;;  %6482 = vmatprep.subr.mxu1 %v7238_v2 }
 0x2d5   :  { %6563 = vmatpush3.msra.mxu0 %v7466_v32  ;;  %6564 = vmatprep.mubr.msk.f32.mxu0 %vm7237_vm0, %v7238_v2  ;;  %vm785_vm8 = vcmp.eq.s32.totalorder %v7474_v35, %v777_v47  ;;  %v1784_v59 = vsub.f32 %v7638_v52, %v1783_v34 }
 0x2d6   :  { %6567 = vmatprep.subr.mxu0 %v7238_v2  ;;  %v7650_v55 = vsel %vm785_vm8, 1.0, %v7238_v2 }
 0x2d7   :  { %v3947_v58 = vsel %vm802_vm2, %v7650_v55, 0 }
 0x2d8   :  { %v4016_v5 = vsub.f32 %v3947_v58, %v3947_v58  ;;  %v4414_v58 = vrot.slane %v7426_v43, %v7439_v3 }
 0x2da   :  { %6480 = vmatmul.mubr.msk.f32.vlgmr.msra.gmra.mrb[0].mxu1 %vm802_vm2, %v7480_v42  ;;  %v4017_v10 = vand.u32 4294901760, %v4016_v5 }
 0x2db   :  { %6483 = vmatpush3.msra.mxu1 %v7458_v22  ;;  %6484 = vmatprep.mubr.msk.f32.mxu1 %vm7237_vm0, %v7238_v2  ;;  %v3049_v22 = vsel %vm802_vm2, %v7556_v26, 0 }
 0x2dc   :  { %6565 = vmatmul.mubr.f32.vlgmr.msra.gmra.mrb[2].mxu0 %v2221_v6  ;;  %6487 = vmatprep.subr.mxu1 %v7238_v2  ;;  %v7572_v37 = vsub.f32 %v3049_v22, %v3049_v22  ;;  %v1785_v6 = vand.u32 4294901760, %v1784_v59  ;;  %v4018_v13 = vsub.f32 %v4016_v5, %v4017_v10  ;;  %v4422_v59 = vcombine.high %v4414_v58, %v4414_v58 }
 0x2dd   :  { %6568 = vmatpush3.msra.mxu0 %v2232_v56  ;;  %6569 = vmatprep.mubr.msk.f32.mxu0 %vm7237_vm0, %v7238_v2  ;;  %v1772_v56 = vand.u32 4294901760, %v7640_v53 }
 0x2de   :  { %6572 = vmatprep.subr.mxu0 %v7238_v2  ;;  %v3119_v41 = vand.u32 4294901760, %v7572_v37 }
 0x2df   :  { %v1773_v62 = vsub.f32 %v7640_v53, %v1772_v56 }
 0x2e1   :  { %v1774_v8 = vand.u32 4294901760, %v1773_v62 }
 0x2e2   :  { %6485 = vmatmul.mubr.msk.f32.vlgmr.msra.gmra.mrb[0].mxu1 %vm802_vm2, %v7480_v42  ;;  %v3131_v42 = vsub.f32 %v7570_v33, %v3130_v40 }
 0x2e3   :  { %6488 = vmatpush3.msra.mxu1 %v7533_v16  ;;  %6489 = vmatprep.mubr.msk.f32.mxu1 %vm7237_vm0, %v7238_v2 }
 0x2e4   :  { %6570 = vmatmul.mubr.msk.f32.vlgmr.msra.gmra.mrb[2].mxu0 %vm802_vm2, %v7494_v57  ;;  %6492 = vmatprep.subr.mxu1 %v7238_v2  ;;  %v3132_v44 = vand.u32 4294901760, %v3131_v42 }
 0x2e5   :  { %6573 = vmatpush3.msra.mxu0 %v7466_v32  ;;  %6574 = vmatprep.mubr.msk.f32.mxu0 %vm7237_vm0, %v7238_v2  ;;  %v3120_v32 = vsub.f32 %v7572_v37, %v3119_v41 }
 0x2e6   :  { %6490 = vmatmul.mubr.f32.vlgmr.msra.gmra.mrb[2].mxu1 %v1325_v39  ;;  %6607 = vmatprep.subr.mxu0 %v7238_v2 }
 0x2e7   :  { %6493 = vmatpush3.msra.mxu1 %v1336_v38  ;;  %6494 = vmatprep.mubr.msk.f32.mxu1 %vm7237_vm0, %v7238_v2  ;;  %v3121_v45 = vand.u32 4294901760, %v3120_v32 }
 0x2e8   :  { %6497 = vmatprep.subr.mxu1 %v7238_v2 }
 0x2ec   :  { %6575 = vmatmul.mubr.msk.f32.vlgmr.msra.gmra.mrb[2].mxu0 %vm802_vm2, %v7494_v57  ;;  %v7656_v57 = vand.u32 4294901760, %v112_v54 }
 0x2ed   :  { %6608 = vmatpush3.msra.mxu0 %v7562_v29  ;;  %6609 = vmatprep.mubr.msk.f32.mxu0 %vm7237_vm0, %v7238_v2 }
 0x2ee   :  { %6495 = vmatmul.mubr.msk.f32.vlgmr.msra.gmra.mrb[2].mxu1 %vm802_vm2, %v7529_v15  ;;  %6612 = vmatprep.subr.mxu0 %v7238_v2  ;;  %v7664_v0 = vsub.f32 %v112_v54, %v7656_v57 }
 0x2ef   :  { %6498 = vmatpush3.msra.mxu1 %v7544_v20  ;;  %6499 = vmatprep.mubr.msk.f32.mxu1 %vm7237_vm0, %v7238_v2  ;;  %v2600_v20 = vsel %vm802_vm2, %v7712_v17, 0 }
 0x2f0   :  { %6610 = vmatmul.mubr.f32.vlgmr.msra.gmra.mrb[4].mxu0 %v3121_v45  ;;  %6502 = vmatprep.subr.mxu1 %v7238_v2  ;;  %v4028_v9 = vand.u32 4294901760, %v7664_v0 }
 0x2f1   :  { %6613 = vmatpush3.msra.mxu0 %v3132_v44  ;;  %6614 = vmatprep.mubr.msk.f32.mxu0 %vm7237_vm0, %v7238_v2 }
 0x2f2   :  { %6617 = vmatprep.subr.mxu0 %v7238_v2  ;;  %v4029_v11 = vsub.f32 %v7664_v0, %v4028_v9 }
 0x2f4   :  { %v4030_v14 = vand.u32 4294901760, %v4029_v11 }
 0x2f6   :  { %6500 = vmatmul.mubr.f32.vlgmr.msra.gmra.mrb[2].mxu1 %v7546_v21  ;;  %v2669_v21 = vsub.f32 %v2600_v20, %v2600_v20 }
 0x2f7   :  { %6503 = vmatpush3.msra.mxu1 %v7533_v16  ;;  %6504 = vmatprep.mubr.msk.f32.mxu1 %vm7237_vm0, %v7238_v2 }
 0x2f8   :  { %6615 = vmatmul.mubr.msk.f32.vlgmr.msra.gmra.mrb[4].mxu0 %vm802_vm2, %v7556_v26  ;;  %6507 = vmatprep.subr.mxu1 %v7238_v2 }
 0x2f9   :  { %6618 = vmatpush3.msra.mxu0 %v7570_v33  ;;  %6619 = vmatprep.mubr.msk.f32.mxu0 %vm7237_vm0, %v7238_v2  ;;  %v3501_v33 = vand.u32 4294901760, %v111_v30 }
 0x2fa   :  { %6622 = vmatprep.subr.mxu0 %v7238_v2 }
 0x2fb   :  { %v3578_v38 = vsub.f32 %v111_v30, %v3501_v33 }
 0x2fd   :  { %v3579_v12 = vand.u32 4294901760, %v3578_v38 }
 0x2fe   :  { %6505 = vmatmul.mubr.f32.vlgmr.msra.gmra.mrb[2].mxu1 %v1323_v27 }
 0x2ff   :  { %6508 = vmatpush3.msra.mxu1 %v1334_v25  ;;  %6509 = vmatprep.mubr.msk.f32.mxu1 %vm7237_vm0, %v7238_v2  ;;  %v2670_v25 = vand.u32 4294901760, %v2669_v21 }
 0x300   :  { %6620 = vmatmul.mubr.f32.vlgmr.msra.gmra.mrb[4].mxu0 %v7572_v37  ;;  %6512 = vmatprep.subr.mxu1 %v7238_v2  ;;  %v3498_v37 = vsel %vm802_vm2, %v6177_v31, 0 }
 0x301   :  { %6623 = vmatpush3.msra.mxu0 %v7562_v29  ;;  %6624 = vmatprep.mubr.msk.f32.mxu0 %vm7237_vm0, %v7238_v2  ;;  %v2671_v27 = vsub.f32 %v2669_v21, %v2670_v25  ;;  %v3567_v39 = vsub.f32 %v3498_v37, %v3498_v37 }
 0x302   :  { %6627 = vmatprep.subr.mxu0 %v7238_v2 }
 0x303   :  { %v2672_v22 = vand.u32 4294901760, %v2671_v27 }
 0x306   :  { %6510 = vmatmul.mubr.msk.f32.vlgmr.msra.gmra.mrb[2].mxu1 %vm802_vm2, %v7529_v15 }
 0x307   :  { %6513 = vmatpush3.msra.mxu1 %v7533_v16  ;;  %6514 = vmatprep.mubr.msk.f32.mxu1 %vm7237_vm0, %v7238_v2  ;;  %v109_v16 = vld [vmem:[#allocation6 + $0x20] sm:$0xff] }
 0x308   :  { %6625 = vmatmul.mubr.f32.vlgmr.msra.gmra.mrb[4].mxu0 %v3119_v41  ;;  %6517 = vmatprep.subr.mxu1 %v7238_v2  ;;  %v2603_v19 = vand.u32 4294901760, %v109_v16  ;;  %v3580_v41 = vsub.f32 %v3578_v38, %v3579_v12 }
 0x309   :  { %6628 = vmatpush3.msra.mxu0 %v3130_v40  ;;  %6629 = vmatprep.mubr.msk.f32.mxu0 %vm7237_vm0, %v7238_v2  ;;  %v3568_v40 = vand.u32 4294901760, %v3567_v39 }
 0x30a   :  { %6632 = vmatprep.subr.mxu0 %v7238_v2  ;;  %v2680_v60 = vsub.f32 %v109_v16, %v2603_v19  ;;  %v3581_v32 = vand.u32 4294901760, %v3580_v41 }
 0x30b   :  { %v3569_v42 = vsub.f32 %v3567_v39, %v3568_v40 }
 0x30c   :  { %v2681_v24 = vand.u32 4294901760, %v2680_v60 }
 0x30d   :  { %v3570_v44 = vand.u32 4294901760, %v3569_v42 }
 0x30e   :  { %6515 = vmatmul.mubr.msk.f32.vlgmr.msra.gmra.mrb[2].mxu1 %vm802_vm2, %v7529_v15  ;;  %v4019_v15 = vand.u32 4294901760, %v4018_v13 }
 0x30f   :  { %6518 = vmatpush3.msra.mxu1 %v7626_v50  ;;  %6519 = vmatprep.mubr.msk.f32.mxu1 %vm7237_vm0, %v7238_v2 }
 0x310   :  { %6630 = vmatmul.mubr.msk.f32.vlgmr.msra.gmra.mrb[4].mxu0 %vm802_vm2, %v7556_v26  ;;  %6522 = vmatprep.subr.mxu1 %v7238_v2 }
 0x311   :  { %6633 = vmatpush3.msra.mxu0 %v7562_v29  ;;  %6634 = vmatprep.mubr.msk.f32.mxu0 %vm7237_vm0, %v7238_v2 }
 0x312   :  { %6520 = vmatmul.mubr.f32.vlgmr.msra.gmra.mrb[4].mxu1 %v1774_v8  ;;  %6667 = vmatprep.subr.mxu0 %v7238_v2 }
 0x313   :  { %6523 = vmatpush3.msra.mxu1 %v1785_v6  ;;  %6524 = vmatprep.mubr.msk.f32.mxu1 %vm7237_vm0, %v7238_v2 }
 0x314   :  { %6527 = vmatprep.subr.mxu1 %v7238_v2 }
 0x318   :  { %6635 = vmatmul.mubr.msk.f32.vlgmr.msra.gmra.mrb[4].mxu0 %vm802_vm2, %v7556_v26  ;;  %v2682_v26 = vsub.f32 %v2680_v60, %v2681_v24 }
 0x319   :  { %6668 = vmatpush3.msra.mxu0 %v7656_v57  ;;  %6669 = vmatprep.mubr.msk.f32.mxu0 %vm7237_vm0, %v7238_v2 }
 0x31a   :  { %6525 = vmatmul.mubr.msk.f32.vlgmr.msra.gmra.mrb[4].mxu1 %vm802_vm2, %v7622_v48  ;;  %6672 = vmatprep.subr.mxu0 %v7238_v2  ;;  %v2683_v29 = vand.u32 4294901760, %v2682_v26 }
 0x31b   :  { %6528 = vmatpush3.msra.mxu1 %v7638_v52  ;;  %6529 = vmatprep.mubr.msk.f32.mxu1 %vm7237_vm0, %v7238_v2 }
 0x31c   :  { %6670 = vmatmul.mubr.f32.vlgmr.msra.gmra.mrb[6].mxu0 %v4019_v15  ;;  %6532 = vmatprep.subr.mxu1 %v7238_v2 }
 0x31d   :  { %6673 = vmatpush3.msra.mxu0 %v4030_v14  ;;  %6674 = vmatprep.mubr.msk.f32.mxu0 %vm7237_vm0, %v7238_v2 }
 0x31e   :  { %6677 = vmatprep.subr.mxu0 %v7238_v2 }
 0x322   :  { %6530 = vmatmul.mubr.f32.vlgmr.msra.gmra.mrb[4].mxu1 %v7640_v53 }
 0x323   :  { %6533 = vmatpush3.msra.mxu1 %v7626_v50  ;;  %6534 = vmatprep.mubr.msk.f32.mxu1 %vm7237_vm0, %v7238_v2 }
 0x324   :  { %6675 = vmatmul.mubr.msk.f32.vlgmr.msra.gmra.mrb[6].mxu0 %vm802_vm2, %v7650_v55  ;;  %6537 = vmatprep.subr.mxu1 %v7238_v2 }
 0x325   :  { %6678 = vmatpush3.msra.mxu0 %v7664_v0  ;;  %6679 = vmatprep.mubr.msk.f32.mxu0 %vm7237_vm0, %v7238_v2  ;;  %v4407_v0 = vcombine.high %v7426_v43, %v7426_v43 }
 0x326   :  { %6682 = vmatprep.subr.mxu0 %v7238_v2 }
 0x327   :  { %v4421_v8 = vrot.slane %v4407_v0, %v7439_v3 }
 0x329   :  { %v4423_v14 = vcombine.high %v4421_v8, %v4421_v8 }
 0x32a   :  { %6535 = vmatmul.mubr.f32.vlgmr.msra.gmra.mrb[4].mxu1 %v1772_v56 }
 0x32b   :  { %6538 = vmatpush3.msra.mxu1 %v1783_v34  ;;  %6539 = vmatprep.mubr.msk.f32.mxu1 %vm7237_vm0, %v7238_v2 }
 0x32c   :  { %6680 = vmatmul.mubr.f32.vlgmr.msra.gmra.mrb[6].mxu0 %v4016_v5  ;;  %6542 = vmatprep.subr.mxu1 %v7238_v2  ;;  %v4444_v5 = vrot.slane %v4422_v59, %v7439_v3  ;;  %v6203_v59 = vld [vmem:[%s8215_s6] ss:$0 sm:$0xff] }
 0x32d   :  { %6683 = vmatpush3.msra.mxu0 %v7656_v57  ;;  %6684 = vmatprep.mubr.msk.f32.mxu0 %vm7237_vm0, %v7238_v2 }
 0x32e   :  { %6687 = vmatprep.subr.mxu0 %v7238_v2 }
 0x332   :  { %6540 = vmatmul.mubr.msk.f32.vlgmr.msra.gmra.mrb[4].mxu1 %vm802_vm2, %v7622_v48 }
 0x333   :  { %6543 = vmatpush3.msra.mxu1 %v7626_v50  ;;  %6544 = vmatprep.mubr.msk.f32.mxu1 %vm7237_vm0, %v7238_v2 }
 0x334   :  { %6685 = vmatmul.mubr.f32.vlgmr.msra.gmra.mrb[6].mxu0 %v4017_v10  ;;  %6577 = vmatprep.subr.mxu1 %v7238_v2  ;;  %v4463_v10 = vrot.slane %v4444_v5, %v7447_v7 }
 0x335   :  { %6688 = vmatpush3.msra.mxu0 %v4028_v9  ;;  %6689 = vmatprep.mubr.msk.f32.mxu0 %vm7237_vm0, %v7238_v2  ;;  %v4454_v9 = vcombine.high %v4444_v5, %v4444_v5 }
 0x336   :  { %6692 = vmatprep.subr.mxu0 %v7238_v2 }
 0x337   :  { %v4471_v15 = vrot.slane %v4454_v9, %v7447_v7 }
 0x33a   :  { %6545 = vmatmul.mubr.msk.f32.vlgmr.msra.gmra.mrb[4].mxu1 %vm802_vm2, %v7622_v48 }
 0x33b   :  { %6578 = vmatpush3.msra.mxu1 %v2603_v19  ;;  %6579 = vmatprep.mubr.msk.f32.mxu1 %vm7237_vm0, %v7238_v2 }
 0x33c   :  { %6690 = vmatmul.mubr.msk.f32.vlgmr.msra.gmra.mrb[6].mxu0 %vm802_vm2, %v7650_v55  ;;  %6582 = vmatprep.subr.mxu1 %v7238_v2 }
 0x33d   :  { %6693 = vmatpush3.msra.mxu0 %v7656_v57  ;;  %6694 = vmatprep.mubr.msk.f32.mxu0 %vm7237_vm0, %v7238_v2 }
 0x33e   :  { %6580 = vmatmul.mubr.f32.vlgmr.msra.gmra.mrb[6].mxu1 %v2672_v22  ;;  %6871 = vmatprep.subr.bf16.mxu0 %v7236_v1 }
 0x33f   :  { %6583 = vmatpush3.msra.mxu1 %v2683_v29  ;;  %6584 = vmatprep.mubr.msk.f32.mxu1 %vm7237_vm0, %v7238_v2 }
 0x340   :  { %6587 = vmatprep.subr.mxu1 %v7238_v2 }
 0x344   :  { %6695 = vmatmul.mubr.msk.f32.vlgmr.msra.gmra.mrb[6].mxu0 %vm802_vm2, %v7650_v55 }
 0x345   :  { %6716 = vmatprep.mubr.msk.f32.mxu0 %vm7237_vm0, %v7238_v2 }
 0x346   :  { %6585 = vmatmul.mubr.msk.f32.vlgmr.msra.gmra.mrb[6].mxu1 %vm802_vm2, %v7712_v17 }
 0x347   :  { %6588 = vmatpush3.msra.mxu1 %v2680_v60  ;;  %6589 = vmatprep.mubr.msk.f32.mxu1 %vm7237_vm0, %v7238_v2  ;;  %v4430_v60 = vrot.slane %v4414_v58, %v7439_v3 }
 0x348   :  { %6592 = vmatprep.subr.mxu1 %v7238_v2 }
 0x349   :  { %v4452_v27 = vcombine.high %v4430_v60, %v4430_v60 }
 0x34b   :  { %v4467_v29 = vrot.slane %v4452_v27, %v7447_v7 }
 0x34e   :  { %6590 = vmatmul.mubr.f32.vlgmr.msra.gmra.mrb[6].mxu1 %v2669_v21 }
 0x34f   :  { %6593 = vmatpush3.msra.mxu1 %v2603_v19  ;;  %6594 = vmatprep.mubr.msk.f32.mxu1 %vm7237_vm0, %v7238_v2 }
 0x350   :  { %6597 = vmatprep.subr.mxu1 %v7238_v2 }
 0x356   :  { %6595 = vmatmul.mubr.f32.vlgmr.msra.gmra.mrb[6].mxu1 %v2670_v25 }
 0x357   :  { %6598 = vmatpush3.msra.mxu1 %v2681_v24  ;;  %6599 = vmatprep.mubr.msk.f32.mxu1 %vm7237_vm0, %v7238_v2  ;;  %v4459_v24 = vrot.slane %v4430_v60, %v7447_v7 }
 0x358   :  { %6602 = vmatprep.subr.mxu1 %v7238_v2 }
 0x35e   :  { %6600 = vmatmul.mubr.msk.f32.vlgmr.msra.gmra.mrb[6].mxu1 %vm802_vm2, %v7712_v17 }
 0x35f   :  { %6603 = vmatpush3.msra.mxu1 %v2603_v19  ;;  %6604 = vmatprep.mubr.msk.f32.mxu1 %vm7237_vm0, %v7238_v2 }
 0x360   :  { %6637 = vmatprep.subr.mxu1 %v7238_v2 }
 0x366   :  { %6605 = vmatmul.mubr.msk.f32.vlgmr.msra.gmra.mrb[6].mxu1 %vm802_vm2, %v7712_v17  ;;  %v4451_v17 = vrot.slane %v4423_v14, %v7439_v3 }
 0x367   :  { %6638 = vmatpush3.msra.mxu1 %v3501_v33  ;;  %6639 = vmatprep.mubr.msk.f32.mxu1 %vm7237_vm0, %v7238_v2 }
 0x368   :  { %6642 = vmatprep.subr.mxu1 %v7238_v2  ;;  %v4479_v43 = vrot.slane %v4451_v17, %v7447_v7 }
 0x36a   :  { %6640 = vmatmul.mubr.f32.vlgmr.msra.gmra.mrb[8].mxu1 %v3570_v44 }
 0x36b   :  { %6643 = vmatpush3.msra.mxu1 %v3581_v32  ;;  %6644 = vmatprep.mubr.msk.f32.mxu1 %vm7237_vm0, %v7238_v2 }
 0x36c   :  { %6647 = vmatprep.subr.mxu1 %v7238_v2 }
 0x372   :  { %6645 = vmatmul.mubr.msk.f32.vlgmr.msra.gmra.mrb[8].mxu1 %vm802_vm2, %v6177_v31 }
 0x373   :  { %6648 = vmatpush3.msra.mxu1 %v3578_v38  ;;  %6649 = vmatprep.mubr.msk.f32.mxu1 %vm7237_vm0, %v7238_v2 }
 0x374   :  { %6652 = vmatprep.subr.mxu1 %v7238_v2 }
 0x37a   :  { %6650 = vmatmul.mubr.f32.vlgmr.msra.gmra.mrb[8].mxu1 %v3567_v39  ;;  %v4437_v39 = vrot.slane %v4421_v8, %v7439_v3 }
 0x37b   :  { %6653 = vmatpush3.msra.mxu1 %v3501_v33  ;;  %6654 = vmatprep.mubr.msk.f32.mxu1 %vm7237_vm0, %v7238_v2 }
 0x37c   :  { %6657 = vmatprep.subr.mxu1 %v7238_v2  ;;  %v4453_v42 = vcombine.high %v4437_v39, %v4437_v39 }
 0x37e   :  { %v4483_v32 = vrot.slane %v4453_v42, %v7447_v7 }
 0x382   :  { %6655 = vmatmul.mubr.f32.vlgmr.msra.gmra.mrb[8].mxu1 %v3568_v40 }
 0x383   :  { %6658 = vmatpush3.msra.mxu1 %v3579_v12  ;;  %6659 = vmatprep.mubr.msk.f32.mxu1 %vm7237_vm0, %v7238_v2  ;;  %v4475_v12 = vrot.slane %v4437_v39, %v7447_v7 }
 0x384   :  { %6662 = vmatprep.subr.mxu1 %v7238_v2 }
 0x38a   :  { %6660 = vmatmul.mubr.msk.f32.vlgmr.msra.gmra.mrb[8].mxu1 %vm802_vm2, %v6177_v31 }
 0x38b   :  { %6663 = vmatpush3.msra.mxu1 %v3501_v33  ;;  %6664 = vmatprep.mubr.msk.f32.mxu1 %vm7237_vm0, %v7238_v2 }
 0x38c   :  { %6865 = vmatprep.subr.bf16.mxu1 %v7236_v1 }
 0x392   :  { %6665 = vmatmul.mubr.msk.f32.vlgmr.msra.gmra.mrb[8].mxu1 %vm802_vm2, %v6177_v31  ;;  %v4455_v31 = vcombine.high %v4451_v17, %v4451_v17  ;;  %v7865_v17 = vsub.s32 1, %v7433_v61  ;;  %vm4714_vm2 = vcmask 1045509  }
 0x393   :  { %6705 = vmatprep.mubr.msk.f32.mxu1 %vm7237_vm0, %v7238_v2 }
 0x394   :  { %v4487_v33 = vrot.slane %v4455_v31, %v7447_v7 }
 0x3b5   :  { %v7795_v45 = vpop.f32.mrb[0].mxu1 }
 0x3b6   :  { %v6486_v46 = vpop.f32.mrb[1].mxu1  ;;  %4504 = vrot.lane.b32.xlu1 %v7795_v45, %s7241_s3 }
 0x3bf   :  { %v7799_v48 = vpop.f32.mrb[2].mxu0 }
 0x3c0   :  { %4510 = vrot.lane.b32.xlu1 %v7799_v48, %s7241_s3  ;;  %v6576_v49 = vpop.f32.mrb[3].mxu0 }
 0x3e1   :  { %v7803_v50 = vpop.f32.mrb[2].mxu1 }
 0x3e2   :  { %v6516_v51 = vpop.f32.mrb[3].mxu1  ;;  %4506 = vrot.lane.b32.xlu1 %v7803_v50, %s7241_s3 }
 0x3eb   :  { %v7807_v47 = vpop.f32.mrb[4].mxu0 }
 0x3ec   :  { %4514 = vrot.lane.b32.xlu0 %v7807_v47, %s7241_s3  ;;  %v6636_v52 = vpop.f32.mrb[5].mxu0 }
 0x40d   :  { %v7811_v53 = vpop.f32.mrb[4].mxu1 }
 0x40e   :  { %v6546_v54 = vpop.f32.mrb[5].mxu1  ;;  %4508 = vrot.lane.b32.xlu1 %v7811_v53, %s7241_s3 }
 0x417   :  { %v7815_v34 = vpop.f32.mrb[6].mxu0 }
 0x418   :  { %4518 = vrot.lane.b32.xlu0 %v7815_v34, %s7241_s3  ;;  %v6696_v55 = vpop.f32.mrb[7].mxu0 }
 0x428   :  { %v4505_v62 = vpop.permute.xlu1 %4504 }
 0x429   :  { %v4528_v26 = vmul.f32 %v4505_v62, %v4459_v24  ;;  %v7088_v62 = vld [vmem:[#allocation3] sm:$0xff] }
 0x42a   :  { %v4402_v0 = vmul.f32 %v7088_v62, %v6203_v59  ;;  %v7916_v62 = vsub.s32 %v7474_v35, %v7433_v61 }
 0x42c   :  { %v4403_v5 = vsel %vm117_vm1, %v4402_v0, 0.0 }
 0x432   :  { %v4511_v6 = vpop.permute.xlu1 %4510 }
 0x433   :  { %v4531_v16 = vmul.f32 %v4511_v6, %v4471_v15 }
 0x439   :  { %v7819_v56 = vpop.f32.mrb[6].mxu1 }
 0x43a   :  { %v6606_v57 = vpop.f32.mrb[7].mxu1  ;;  %4512 = vrot.lane.b32.xlu1 %v7819_v56, %s7241_s3 }
 0x454   :  { %v4507_v11 = vpop.permute.xlu1 %4506 }
 0x455   :  { %v4529_v13 = vmul.f32 %v4507_v11, %v4463_v10 }
 0x457   :  { %4546 = vrot.lane.b32.xlu0 %v4529_v13, %s7242_s4 }
 0x45b   :  { %4550 = vrot.lane.b32.xlu0 %v4531_v16, %s7242_s4 }
 0x45e   :  { %v4515_v19 = vpop.permute.xlu0 %4514 }
 0x45f   :  { %v4533_v20 = vmul.f32 %v4515_v19, %v4479_v43  ;;  %v7868_v43 = vsub.s32 3, %v7433_v61 }
 0x461   :  { %4554 = vrot.lane.b32.xlu0 %v4533_v20, %s7242_s4 }
 0x465   :  { %v7837_v21 = vpop.f32.mrb[8].mxu1 }
 0x466   :  { %v6666_v25 = vpop.f32.mrb[9].mxu1  ;;  %4516 = vrot.lane.b32.xlu1 %v7837_v21, %s7241_s3 }
 0x467   :  { %v7873_v25 = vsub.s32 2, %v7433_v61 }
 0x46a   :  { %4544 = vrot.lane.b32.xlu1 %v4528_v26, %s7242_s4 }
 0x480   :  { %v4509_v22 = vpop.permute.xlu1 %4508 }
 0x481   :  { %v4530_v30 = vmul.f32 %v4509_v22, %v4467_v29 }
 0x483   :  { %4548 = vrot.lane.b32.xlu1 %v4530_v30, %s7242_s4 }
 0x48a   :  { %v4519_v37 = vpop.permute.xlu0 %4518 }
 0x48b   :  { %v4535_v38 = vmul.f32 %v4519_v37, %v4487_v33  ;;  %v7886_v33 = vsub.s32 5, %v7433_v61 }
 0x48d   :  { %4558 = vrot.lane.b32.xlu0 %v4535_v38, %s7242_s4  ;;  %v7890_v38 = vsub.s32 7, %v7433_v61 }
 0x4ac   :  { %v4513_v40 = vpop.permute.xlu1 %4512 }
 0x4ad   :  { %v4532_v41 = vmul.f32 %v4513_v40, %v4475_v12 }
 0x4af   :  { %4552 = vrot.lane.b32.xlu1 %v4532_v41, %s7242_s4 }
 0x4c9   :  { %v4547_v49 = vpop.permute.xlu0 %4546 }
 0x4ca   :  { %v4572_v3 = vsel %vm4568_vm11, %v4547_v49, 0.0 }
 0x4cd   :  { %v4551_v54 = vpop.permute.xlu0 %4550 }
 0x4ce   :  { %v4578_v55 = vsel %vm4568_vm11, %v4551_v54, 0.0 }
 0x4d3   :  { %v4555_v57 = vpop.permute.xlu0 %4554 }
 0x4d4   :  { %v4584_v58 = vsel %vm4568_vm11, %v4555_v57, 0.0 }
 0x4d8   :  { %v4517_v44 = vpop.permute.xlu1 %4516 }
 0x4d9   :  { %v4534_v46 = vmul.f32 %v4517_v44, %v4483_v32 }
 0x4db   :  { %4556 = vrot.lane.b32.xlu1 %v4534_v46, %s7242_s4  ;;  %v7904_v46 = vsub.s32 4, %v7433_v61 }
 0x4dc   :  { %v4545_v51 = vpop.permute.xlu1 %4544 }
 0x4dd   :  { %v4569_v52 = vsel %vm4568_vm11, %v4545_v51, 0.0 }
 0x4de   :  { %4570 = vadd.xlane.f32.xlu0 %v4569_v52 }
 0x4e2   :  { %4573 = vadd.xlane.f32.xlu0 %v4572_v3  ;;  %v7908_v3 = vsub.s32 6, %v7433_v61 }
 0x4e6   :  { %4579 = vadd.xlane.f32.xlu0 %v4578_v55 }
 0x4ea   :  { %4585 = vadd.xlane.f32.xlu0 %v4584_v58 }
 0x4f5   :  { %v4549_v6 = vpop.permute.xlu1 %4548 }
 0x4f6   :  { %v4575_v10 = vsel %vm4568_vm11, %v4549_v6, 0.0 }
 0x4ff   :  { %4404 = vadd.xlane.f32.xlu1 %v4403_v5  ;;  %v4559_v8 = vpop.permute.xlu0 %4558 }
 0x500   :  { %v4590_v9 = vsel %vm4568_vm11, %v4559_v8, 0.0 }
 0x501   :  { %4591 = vadd.xlane.f32.xlu0 %v4590_v9 }
 0x503   :  { %4576 = vadd.xlane.f32.xlu1 %v4575_v10 }
 0x521   :  { %v4553_v11 = vpop.permute.xlu1 %4552 }
 0x522   :  { %v4581_v13 = vsel %vm4568_vm11, %v4553_v11, 0.0 }
 0x523   :  { %4582 = vadd.xlane.f32.xlu1 %v4581_v13 }
 0x54d   :  { %v4557_v14 = vpop.permute.xlu1 %4556 }
 0x54e   :  { %v4587_v15 = vsel %vm4568_vm11, %v4557_v14, 0.0 }
 0x54f   :  { %4588 = vadd.xlane.f32.xlu1 %v4587_v15 }
 0x56b   :  { %v4571_v16 = vpop.xlane.xlu0 %4570 }
 0x56f   :  { %v4574_v19 = vpop.xlane.xlu0 %4573 }
 0x573   :  { %v4580_v22 = vpop.xlane.xlu0 %4579 }
 0x577   :  { %v4586_v40 = vpop.xlane.xlu0 %4585 }
 0x58c   :  { %v4405_v20 = vpop.xlane.xlu1 %4404 }
 0x58d   :  { %v4597_v60 = vrot.slane %v4405_v20, %v7447_v7  ;;  %v4601_v24 = vrot.slane %v4405_v20, %v7865_v17  ;;  %v4609_v29 = vrot.slane %v4405_v20, %v7868_v43  ;;  %v4605_v30 = vrot.slane %v4405_v20, %v7873_v25 }
 0x58e   :  { %v4617_v12 = vrot.slane %v4405_v20, %v7886_v33  ;;  %v4625_v41 = vrot.slane %v4405_v20, %v7890_v38  ;;  %v4592_v32 = vpop.xlane.xlu0 %4591  ;;  %v4613_v49 = vrot.slane %v4405_v20, %v7904_v46  ;;  %v4621_v54 = vrot.slane %v4405_v20, %v7908_v3 }
 0x58f   :  { %v7875_v26 = vadd.f32 %v4597_v60, %v4571_v16  ;;  %v7877_v27 = vadd.f32 %v4601_v24, %v4574_v19  ;;  %v7883_v31 = vadd.f32 %v4609_v29, %v4580_v22 }
 0x590   :  { %v4577_v37 = vpop.xlane.xlu1 %4576  ;;  %v7897_v42 = vadd.f32 %v4617_v12, %v4586_v40  ;;  %v7900_v44 = vadd.f32 %v4625_v41, %v4592_v32 }
 0x591   :  { %4651 = vperm.xlu1 %7045, %v7875_v26   ;;  %4654 = vperm.xlu0 %7044, %v7877_v27   ;;  %v7892_v39 = vadd.f32 %v4605_v30, %v4577_v37 }
 0x595   :  { %4660 = vperm.xlu1 %7045, %v7883_v31  }
 0x599   :  { %4657 = vperm.xlu1 %7045, %v7892_v39  }
 0x59d   :  { %4666 = vperm.xlu1 %7045, %v7897_v42  }
 0x5a1   :  { %4672 = vperm.xlu1 %7045, %v7900_v44  }
 0x5b0   :  { %v4583_v51 = vpop.xlane.xlu1 %4582 }
 0x5b1   :  { %v4638_v52 = vadd.f32 %v4613_v49, %v4583_v51 }
 0x5b3   :  { %4663 = vperm.xlu0 %7044, %v4638_v52  }
 0x5dc   :  { %v4589_v55 = vpop.xlane.xlu1 %4588 }
 0x5dd   :  { %v7911_v57 = vadd.f32 %v4621_v54, %v4589_v55 }
 0x5df   :  { %4669 = vperm.xlu0 %7044, %v7911_v57  }
 0x610   :  { %v4652_v58 = vpop.permute.xlu1 %4651  ;;  %v4655_v0 = vpop.permute.xlu0 %4654 }
 0x611   :  { %v4677_v6 = vrot.slane %v4652_v58, %v7916_v62  ;;  %v4681_v8 = vrot.slane %v4655_v0, %v7916_v62 }
 0x613   :  { %v4707_v13 = vsel %vm4706_vm12, %v4681_v8, %v4677_v6 }
 0x614   :  { %v4661_v59 = vpop.permute.xlu1 %4660 }
 0x615   :  { %v4689_v16 = vrot.slane %v4661_v59, %v7916_v62 }
 0x618   :  { %v4658_v5 = vpop.permute.xlu1 %4657 }
 0x619   :  { %v4685_v9 = vrot.slane %v4658_v5, %v7916_v62 }
 0x61b   :  { %v4709_v14 = vsel %vm4708_vm13, %v4685_v9, %v4707_v13 }
 0x61c   :  { %v4667_v11 = vpop.permute.xlu1 %4666  ;;  %v4711_v19 = vsel %vm4710_vm14, %v4689_v16, %v4709_v14 }
 0x61d   :  { %v4697_v24 = vrot.slane %v4667_v11, %v7916_v62 }
 0x620   :  { %v4673_v20 = vpop.permute.xlu1 %4672 }
 0x621   :  { %v4705_v30 = vrot.slane %v4673_v20, %v7916_v62 }
 0x632   :  { %v4664_v10 = vpop.permute.xlu0 %4663 }
 0x633   :  { %v4693_v15 = vrot.slane %v4664_v10, %v7916_v62 }
 0x635   :  { %v4713_v60 = vsel %vm4712_vm15, %v4693_v15, %v4711_v19 }
 0x636   :  { %v4715_v37 = vsel %vm4714_vm2, %v4697_v24, %v4713_v60 }
 0x65e   :  { %v4670_v29 = vpop.permute.xlu0 %4669 }
 0x65f   :  { %v4701_v22 = vrot.slane %v4670_v29, %v7916_v62 }
 0x661   :  { %v4717_v12 = vsel %vm4716_vm3, %v4701_v22, %v4715_v37 }
 0x662   :  { %v4719_v40 = vsel %vm4718_vm4, %v4705_v30, %v4717_v12 }
 0x663   :  { %v4722_v41 = vsel %vm4721_vm5, %v4719_v40, -inf }
 0x664   :  { %4723 = vmax.xlane.f32.xlu0 %v4722_v41 }
 0x67a   :  { %646 = vperm.xlu0 %7044, %v7441_v4  }
 0x6f1   :  { %v4724_v32 = vpop.xlane.xlu0 %4723 }
 0x6f2   :  { %v4729_v49 = vrot.slane %v4724_v32, %v7447_v7  ;;  %v4733_v51 = vrot.slane %v4724_v32, %v7865_v17  ;;  %v4737_v54 = vrot.slane %v4724_v32, %v7873_v25  ;;  %v4741_v0 = vrot.slane %v4724_v32, %v7868_v43 }
 0x6f3   :  { %v4745_v4 = vrot.slane %v4724_v32, %v7904_v46  ;;  %v4749_v10 = vrot.slane %v4724_v32, %v7886_v33 }
 0x6f4   :  { %v4766_v55 = vsub.f32 %v7875_v26, %v4729_v49  ;;  %v4767_v58 = vsub.f32 %v7877_v27, %v4733_v51  ;;  %v4768_v5 = vsub.f32 %v7892_v39, %v4737_v54  ;;  %v4769_v8 = vsub.f32 %v7883_v31, %v4741_v0 }
 0x6f5   :  { %v4770_v11 = vsub.f32 %v4638_v52, %v4745_v4  ;;  %v4753_v27 = vrot.slane %v4724_v32, %v7908_v3  ;;  %v4771_v39 = vsub.f32 %v7897_v42, %v4749_v10  ;;  %v4757_v31 = vrot.slane %v4724_v32, %v7890_v38 }
 0x6f6   :  { %v4774_v59 = vmul.f32 1.442695, %v4766_v55  ;;  %v4776_v6 = vmul.f32 1.442695, %v4767_v58  ;;  %v4778_v9 = vmul.f32 1.442695, %v4768_v5 }
 0x6f7   :  { %v4780_v26 = vmul.f32 1.442695, %v4769_v8  ;;  %v4782_v14 = vmul.f32 1.442695, %v4770_v11  ;;  %v4772_v52 = vsub.f32 %v7911_v57, %v4753_v27  ;;  %v4784_v16 = vmul.f32 1.442695, %v4771_v39 }
 0x6f8   :  { %7052 = vpow2.f32 %v4774_v59  ;;  %v4773_v20 = vsub.f32 %v7900_v44, %v4757_v31  ;;  %v6169_v54 = vadd.s32 4294967294, %v7474_v35 }
 0x6f9   :  { %7054 = vpow2.f32 %v4776_v6  ;;  %v4786_v42 = vmul.f32 1.442695, %v4772_v52  ;;  %v647_v59 = vpop.permute.xlu0 %646 }
 0x6fa   :  { %7056 = vpow2.f32 %v4778_v9  ;;  %v4788_v24 = vmul.f32 1.442695, %v4773_v20  ;;  %v648_v9 = vadd.s32 %v6169_v54, %v647_v59 }
 0x6fb   :  { %7058 = vpow2.f32 %v4780_v26 }
 0x6fc   :  { %7060 = vpow2.f32 %v4782_v14  ;;  %v649_v31 = vcvt.s32.f32 %v648_v9 }
 0x6fd   :  { %7062 = vpow2.f32 %v4784_v16 }
 0x6fe   :  { %7064 = vpow2.f32 %v4786_v42 }
 0x6ff   :  { %7066 = vpow2.f32 %v4788_v24 }
 0x702   :  { %v7945_v13 = vpop.eup %7052 }
 0x703   :  { %4799 = vperm.xlu1 %7045, %v7945_v13   ;;  %v7950_v15 = vpop.eup %7054 }
 0x704   :  { %v7955_v19 = vpop.eup %7056 }
 0x705   :  { %v7959_v60 = vpop.eup %7058 }
 0x706   :  { %v7962_v29 = vpop.eup %7060 }
 0x707   :  { %4802 = vperm.xlu1 %7045, %v7950_v15   ;;  %v7965_v57 = vpop.eup %7062 }
 0x708   :  { %v7968_v22 = vpop.eup %7064 }
 0x709   :  { %v7971_v44 = vpop.eup %7066 }
 0x70b   :  { %4805 = vperm.xlu1 %7045, %v7955_v19  }
 0x70f   :  { %4808 = vperm.xlu1 %7045, %v7959_v60  }
 0x713   :  { %4811 = vperm.xlu1 %7045, %v7962_v29  }
 0x717   :  { %4814 = vperm.xlu1 %7045, %v7965_v57  }
 0x71b   :  { %4817 = vperm.xlu1 %7045, %v7968_v22  }
 0x71f   :  { %4820 = vperm.xlu1 %7045, %v7971_v44  }
 0x723   :  { %652 = vperm.xlu1 %7045, %v7435_v63  }
 0x782   :  { %v4800_v30 = vpop.permute.xlu1 %4799 }
 0x783   :  { %v4825_v55 = vrot.slane %v4800_v30, %v7916_v62 }
 0x786   :  { %v4803_v37 = vpop.permute.xlu1 %4802 }
 0x787   :  { %v4829_v49 = vrot.slane %v4803_v37, %v7916_v62 }
 0x789   :  { %v4854_v5 = vsel %vm4706_vm12, %v4829_v49, %v4825_v55 }
 0x78a   :  { %v4806_v12 = vpop.permute.xlu1 %4805 }
 0x78b   :  { %v4833_v51 = vrot.slane %v4806_v12, %v7916_v62 }
 0x78d   :  { %v4855_v4 = vsel %vm4708_vm13, %v4833_v51, %v4854_v5 }
 0x78e   :  { %v4809_v40 = vpop.permute.xlu1 %4808 }
 0x78f   :  { %v4837_v58 = vrot.slane %v4809_v40, %v7916_v62 }
 0x791   :  { %v4856_v10 = vsel %vm4710_vm14, %v4837_v58, %v4855_v4 }
 0x792   :  { %v4812_v41 = vpop.permute.xlu1 %4811 }
 0x793   :  { %v4841_v0 = vrot.slane %v4812_v41, %v7916_v62 }
 0x795   :  { %v4857_v11 = vsel %vm4712_vm15, %v4841_v0, %v4856_v10 }
 0x796   :  { %v4815_v32 = vpop.permute.xlu1 %4814 }
 0x797   :  { %v4845_v6 = vrot.slane %v4815_v32, %v7916_v62 }
 0x799   :  { %v4858_v27 = vsel %vm4714_vm2, %v4845_v6, %v4857_v11 }
 0x79a   :  { %v4818_v63 = vpop.permute.xlu1 %4817 }
 0x79b   :  { %v4849_v8 = vrot.slane %v4818_v63, %v7916_v62 }
 0x79d   :  { %v4859_v14 = vsel %vm4716_vm3, %v4849_v8, %v4858_v27 }
 0x79e   :  { %v4821_v26 = vpop.permute.xlu1 %4820 }
 0x79f   :  { %v4853_v39 = vrot.slane %v4821_v26, %v7916_v62 }
 0x7a1   :  { %v4860_v52 = vsel %vm4718_vm4, %v4853_v39, %v4859_v14  ;;  %v5103_v14 = vld [vmem:[#allocation11] sm:$0xff] }
 0x7a2   :  { %v653_v16 = vpop.permute.xlu1 %652  ;;  %v4862_v20 = vsel %vm4721_vm5, %v4860_v52, 0.0 }
 0x7a3   :  { %v655_v42 = vsub.f32 %v649_v31, %v653_v16  ;;  %4863 = vadd.xlane.f32.xlu1 %v4862_v20 }
 0x7a5   :  { %v657_v24 = vmul.f32 0.0078125, %v655_v42 }
 0x7a7   :  { %v658_v30 = vmul.f32 -2.0, %v657_v24 }
 0x7a9   :  { %v659_v37 = vmul.f32 %v658_v30, %v657_v24 }
 0x7ab   :  { %v660_v12 = vmul.f32 1.442695, %v659_v37  ;;  %v5105_v37 = vld [vmem:[#allocation11 + $0x10] sm:$0xff] }
 0x7ad   :  { %7068 = vpow2.f32 %v660_v12  ;;  %v5106_v12 = vld [vmem:[#allocation11 + $0x18] sm:$0xff] }
 0x7b7   :  { %v7069_v40 = vpop.eup %7068 }
 0x7b8   :  { %v4961_v41 = vrot.slane %v7069_v40, %v7886_v33  ;;  %v4926_v62 = vrot.slane %v7069_v40, %v7447_v7  ;;  %v4933_v32 = vrot.slane %v7069_v40, %v7865_v17  ;;  %v4940_v49 = vrot.slane %v7069_v40, %v7873_v25 }
 0x7b9   :  { %v4947_v51 = vrot.slane %v7069_v40, %v7868_v43  ;;  %v4954_v54 = vrot.slane %v7069_v40, %v7904_v46  ;;  %v4968_v55 = vrot.slane %v7069_v40, %v7908_v3  ;;  %v4975_v58 = vrot.slane %v7069_v40, %v7890_v38 }
 0x7ba   :  { %4963 = vbcast.lane.b32.xlu1 %v4961_v41, 256  ;;  %4928 = vbcast.lane.b32.xlu0 %v4926_v62, 256 }
 0x7be   :  { %4935 = vbcast.lane.b32.xlu0 %v4933_v32, 256 }
 0x7c2   :  { %4942 = vbcast.lane.b32.xlu0 %v4940_v49, 256 }
 0x7c6   :  { %4949 = vbcast.lane.b32.xlu0 %v4947_v51, 256  ;;  %v5114_v51 = vand.u32 4294901760, %v5105_v37 }
 0x7ca   :  { %4956 = vbcast.lane.b32.xlu0 %v4954_v54, 256  ;;  %v5117_v54 = vand.u32 4294901760, %v5106_v12 }
 0x7ce   :  { %4970 = vbcast.lane.b32.xlu0 %v4968_v55, 256 }
 0x7d2   :  { %4977 = vbcast.lane.b32.xlu0 %v4975_v58, 256 }
 0x82c   :  { %v4929_v59 = vpop.permute.xlu0 %4928 }
 0x830   :  { %v4864_v0 = vpop.xlane.xlu1 %4863  ;;  %v4936_v63 = vpop.permute.xlu0 %4935 }
 0x831   :  { %v4889_v5 = vrot.slane %v4864_v0, %v7886_v33  ;;  %v4881_v6 = vrot.slane %v4864_v0, %v7868_v43  ;;  %v4873_v4 = vrot.slane %v4864_v0, %v7865_v17  ;;  %v4869_v9 = vrot.slane %v4864_v0, %v7447_v7  ;;  %v5104_v7 = vld [vmem:[#allocation11 + $0x8] sm:$0xff] }
 0x832   :  { %v4877_v10 = vrot.slane %v4864_v0, %v7873_v25  ;;  %v4897_v26 = vrot.slane %v4864_v0, %v7890_v38  ;;  %v4885_v43 = vrot.slane %v4864_v0, %v7904_v46  ;;  %v4893_v39 = vrot.slane %v4864_v0, %v7908_v3 }
 0x833   :  { %7070 = vrcp.f32 %v4889_v5  ;;  %v5108_v25 = vand.u32 4294901760, %v5103_v14  ;;  %v5111_v52 = vand.u32 4294901760, %v5104_v7  ;;  %v8030_v5 = vsub.f32 %v5105_v37, %v5114_v51 }
 0x834   :  { %v8003_v8 = vpop.permute.xlu0 %4942  ;;  %7072 = vrcp.f32 %v4881_v6  ;;  %v8032_v6 = vsub.f32 %v5106_v12, %v5117_v54 }
 0x835   :  { %7074 = vrcp.f32 %v4873_v4  ;;  %v8016_v30 = vsub.f32 %v5103_v14, %v5108_v25  ;;  %v8018_v46 = vsub.f32 %v5104_v7, %v5111_v52  ;;  %v6869_v7 = vpack.c.bf16 %v5117_v54, %v5114_v51 }
 0x836   :  { %7076 = vrcp.f32 %v4869_v9 }
 0x837   :  { %7078 = vrcp.f32 %v4877_v10  ;;  %v5196_v41 = vand.u32 4294901760, %v8018_v46 }
 0x838   :  { %v4950_v11 = vpop.permute.xlu0 %4949  ;;  %7080 = vrcp.f32 %v4897_v26  ;;  %v5203_v26 = vand.u32 4294901760, %v8030_v5 }
 0x839   :  { %7082 = vrcp.f32 %v4885_v43  ;;  %v5197_v58 = vsub.f32 %v8018_v46, %v5196_v41  ;;  %v5210_v43 = vand.u32 4294901760, %v8032_v6 }
 0x83a   :  { %7084 = vrcp.f32 %v4893_v39 }
 0x83b   :  { %v5198_v9 = vand.u32 4294901760, %v5197_v58 }
 0x83c   :  { %v8008_v27 = vpop.permute.xlu0 %4956 }
 0x83d   :  { %v7071_v17 = vpop.eup %7070 }
 0x83e   :  { %v7073_v33 = vpop.eup %7072  ;;  %v4917_v42 = vmul.f32 %v7071_v17, %v7965_v57  ;;  %v4964_v57 = vpop.permute.xlu1 %4963 }
 0x83f   :  { %v4913_v31 = vmul.f32 %v7073_v33, %v7959_v60  ;;  %v7075_v16 = vpop.eup %7074  ;;  %v5189_v60 = vand.u32 4294901760, %v8016_v30 }
 0x840   :  { %v8013_v38 = vpop.permute.xlu0 %4970  ;;  %v7077_v20 = vpop.eup %7076  ;;  %v4909_v32 = vmul.f32 %v7075_v16, %v7950_v15  ;;  %v4992_v55 = vmul.f32 %v4964_v57, %v4917_v42 }
 0x841   :  { %v4990_v24 = vmul.f32 %v4950_v11, %v4913_v31  ;;  %v4907_v3 = vmul.f32 %v7077_v20, %v7945_v13  ;;  %v7079_v40 = vpop.eup %7078  ;;  %v5190_v13 = vsub.f32 %v8016_v30, %v5189_v60  ;;  %v6866_v11 = vpack.c.bf16 %v5111_v52, %v5108_v25 }
 0x842   :  { %v7081_v62 = vpop.eup %7080  ;;  %v4911_v15 = vmul.f32 %v7079_v40, %v7955_v19  ;;  %v4988_v10 = vmul.f32 %v4936_v63, %v4909_v32  ;;  %v5204_v19 = vsub.f32 %v8030_v5, %v5203_v26  ;;  %v5101_v40 = vld [vmem:[#allocation9 + $0x10] sm:$0xff] }
 0x843   :  { %5012 = vperm.xlu1 %7045, %v4990_v24   ;;  %v4987_v49 = vmul.f32 %v4929_v59, %v4907_v3  ;;  %v4921_v59 = vmul.f32 %v7081_v62, %v7971_v44  ;;  %v5191_v4 = vand.u32 4294901760, %v5190_v13  ;;  %v7083_v17 = vpop.eup %7082  ;;  %6867 = vmatpush3.bf16.msra.mxu1 %v6866_v11  ;;  %v5211_v44 = vsub.f32 %v8032_v6, %v5210_v43  ;;  %v5102_v62 = vld [vmem:[#allocation9 + $0x18] sm:$0xff] }
 0x844   :  { %v4978_v0 = vpop.permute.xlu0 %4977  ;;  %v4989_v14 = vmul.f32 %v8003_v8, %v4911_v15  ;;  %v4915_v63 = vmul.f32 %v7083_v17, %v7962_v29  ;;  %6868 = vmatprep.subr.bf16.mxu1 %v7236_v1  ;;  %v5205_v31 = vand.u32 4294901760, %v5204_v19  ;;  %v7085_v52 = vpop.eup %7084  ;;  %v6878_v29 = vpack.c.bf16 %v8018_v46, %v8016_v30 }
 0x845   :  { %4997 = vperm.xlu0 %7044, %v4987_v49   ;;  %v4994_v33 = vmul.f32 %v4978_v0, %v4921_v59  ;;  %v6872_v39 = vpack.c.bf16 %v5198_v9, %v5191_v4  ;;  %v5212_v25 = vand.u32 4294901760, %v5211_v44  ;;  %v4919_v8 = vmul.f32 %v7085_v52, %v7968_v22 }
 0x846   :  { %v4991_v20 = vmul.f32 %v8008_v27, %v4915_v63  ;;  %v6881_v22 = vpack.c.bf16 %v8032_v6, %v8030_v5  ;;  %v5100_v27 = vld [vmem:[#allocation9 + $0x8] sm:$0xff]  ;;  %v6890_v3 = vpack.c.bf16 %v5196_v41, %v5189_v60  ;;  %v5616_v60 = vand.u32 4294901760, %v5101_v40 }
 0x847   :  { %5022 = vperm.xlu1 %7045, %v4992_v55   ;;  %6873 = vmatpush3.bf16.msra.mxu0 %v6872_v39  ;;  %v6875_v16 = vpack.c.bf16 %v5212_v25, %v5205_v31  ;;  %v4993_v42 = vmul.f32 %v8013_v38, %v4919_v8  ;;  %v5613_v38 = vand.u32 4294901760, %v5100_v27  ;;  %v6893_v41 = vpack.c.bf16 %v5210_v43, %v5203_v26 }
 0x848   :  { %6874 = vmatprep.subr.bf16.mxu0 %v7236_v1  ;;  %6870 = vmatpush3.bf16.msra.mxu1 %v6869_v7  ;;  %v8087_v57 = vsub.f32 %v5101_v40, %v5616_v60  ;;  %v6103_v43 = vadd.s32 4294967264, %v7474_v35 }
 0x849   :  { %5002 = vperm.xlu0 %7044, %v4988_v10   ;;  %6877 = vmatprep.subr.bf16.mxu1 %v7236_v1  ;;  %v8072_v12 = vsub.f32 %v5100_v27, %v5613_v38 }
 0x84a   :  { %v5705_v55 = vand.u32 4294901760, %v8087_v57  ;;  %v8125_v44 = vsub.s32 %v6103_v43, %v7433_v61 }
 0x84b   :  { %5032 = vperm.xlu1 %7045, %v4994_v33   ;;  %6876 = vmatpush3.bf16.msra.mxu0 %v6875_v16  ;;  %v5698_v46 = vand.u32 4294901760, %v8072_v12 }
 0x84c   :  { %6883 = vmatprep.subr.bf16.mxu0 %v7236_v1  ;;  %6706 = vmatmul.mubr.f32.vlgmr.msra.gmra.mrb[10].mxu1 %v7393_v36  ;;  %v5099_v36 = vld [vmem:[#allocation9] sm:$0xff]  ;;  %v5706_v0 = vsub.f32 %v8087_v57, %v5705_v55 }
 0x84d   :  { %5007 = vperm.xlu0 %7044, %v4989_v14   ;;  %6879 = vmatpush3.bf16.msra.mxu1 %v6878_v29  ;;  %v5610_v24 = vand.u32 4294901760, %v5099_v36 }
 0x84e   :  { %6717 = vmatmul.mubr.f32.vlgmr.msra.gmra.mrb[8].mxu0 %v7381_v18  ;;  %6880 = vmatprep.subr.bf16.mxu1 %v7236_v1  ;;  %v5707_v6 = vand.u32 4294901760, %v5706_v0 }
 0x84f   :  { %6885 = vmatpush3.bf16.msra.mxu0 %v6866_v11  ;;  %6727 = vmatprep.mubr.msk.f32.mxu1 %vm7237_vm0, %v7238_v2  ;;  %v8070_v37 = vsub.f32 %v5099_v36, %v5610_v24  ;;  %v8101_v59 = vpack.c.bf16 %v5613_v38, %v5610_v24 }
 0x850   :  { %6886 = vmatprep.subr.bf16.mxu0 %v7236_v1  ;;  %6738 = vmatprep.mubr.msk.f32.mxu0 %vm7237_vm0, %v7238_v2 }
 0x851   :  { %5017 = vperm.xlu0 %7044, %v4991_v20   ;;  %6882 = vmatpush3.bf16.msra.mxu1 %v6881_v22  ;;  %v5691_v30 = vand.u32 4294901760, %v8070_v37 }
 0x852   :  { %6889 = vmatprep.subr.bf16.mxu1 %v7236_v1 }
 0x853   :  { %6888 = vmatpush3.bf16.msra.mxu0 %v6869_v7  ;;  %v5692_v32 = vsub.f32 %v8070_v37, %v5691_v30 }
 0x854   :  { %6895 = vmatprep.subr.bf16.mxu0 %v7236_v1  ;;  %6728 = vmatmul.mubr.f32.vlgmr.msra.gmra.mrb[12].mxu1 %v7385_v23  ;;  %v5619_v23 = vand.u32 4294901760, %v5102_v62 }
 0x855   :  { %5027 = vperm.xlu0 %7044, %v4993_v42   ;;  %6891 = vmatpush3.bf16.msra.mxu1 %v6890_v3  ;;  %v5693_v51 = vand.u32 4294901760, %v5692_v32 }
 0x856   :  { %6749 = vmatprep.mubr.msk.f32.mxu1 %vm7237_vm0, %v7238_v2  ;;  %6739 = vmatmul.mubr.f32.vlgmr.msra.gmra.mrb[10].mxu0 %v7388_v28  ;;  %v5699_v28 = vsub.f32 %v8072_v12, %v5698_v46  ;;  %v8089_v49 = vsub.f32 %v5102_v62, %v5619_v23  ;;  %v8109_v9 = vpack.c.bf16 %v5619_v23, %v5616_v60 }
 0x857   :  { %6892 = vmatprep.subr.bf16.mxu1 %v7236_v1  ;;  %6897 = vmatpush3.bf16.msra.mxu0 %v6866_v11  ;;  %v8117_v11 = vpack.c.bf16 %v5698_v46, %v5691_v30 }
 0x858   :  { %6760 = vmatprep.mubr.msk.f32.mxu0 %vm7237_vm0, %v7238_v2  ;;  %6898 = vmatprep.subr.bf16.mxu0 %v7236_v1  ;;  %v5700_v54 = vand.u32 4294901760, %v5699_v28  ;;  %v5712_v13 = vand.u32 4294901760, %v8089_v49  ;;  %v6917_v10 = vpack.c.bf16 %v8089_v49, %v8087_v57 }
 0x859   :  { %6894 = vmatpush3.bf16.msra.mxu1 %v6893_v41 }
 0x85a   :  { %6901 = vmatprep.subr.bf16.mxu1 %v7236_v1  ;;  %v6908_v58 = vpack.c.bf16 %v5700_v54, %v5693_v51  ;;  %v5713_v5 = vsub.f32 %v8089_v49, %v5712_v13  ;;  %v8119_v26 = vpack.c.bf16 %v5712_v13, %v5705_v55 }
 0x85b   :  { %6900 = vmatpush3.bf16.msra.mxu0 %v6869_v7 }
 0x85c   :  { %6750 = vmatmul.mubr.f32.vlgmr.msra.gmra.mrb[14].mxu1 %v7381_v18  ;;  %6907 = vmatprep.subr.bf16.mxu0 %v7236_v1  ;;  %v5714_v15 = vand.u32 4294901760, %v5713_v5 }
 0x85d   :  { %6771 = vmatprep.mubr.msk.f32.mxu1 %vm7237_vm0, %v7238_v2  ;;  %6903 = vmatpush3.bf16.msra.mxu1 %v8101_v59 }
 0x85e   :  { %6761 = vmatmul.mubr.f32.vlgmr.msra.gmra.mrb[12].mxu0 %v7381_v18  ;;  %v6911_v4 = vpack.c.bf16 %v5714_v15, %v5707_v6  ;;  %6904 = vmatprep.subr.bf16.mxu1 %v7236_v1  ;;  %v6914_v18 = vpack.c.bf16 %v8072_v12, %v8070_v37 }
 0x85f   :  { %6909 = vmatpush3.bf16.msra.mxu0 %v6908_v58  ;;  %6782 = vmatprep.mubr.msk.f32.mxu0 %vm7237_vm0, %v7238_v2 }
 0x860   :  { %6910 = vmatprep.subr.bf16.mxu0 %v7236_v1 }
 0x861   :  { %6906 = vmatpush3.bf16.msra.mxu1 %v8109_v9 }
 0x862   :  { %6913 = vmatprep.subr.bf16.mxu1 %v7236_v1 }
 0x863   :  { %6912 = vmatpush3.bf16.msra.mxu0 %v6911_v4 }
 0x864   :  { %6919 = vmatprep.subr.bf16.mxu0 %v7236_v1 }
 0x8c2   :  { %v5013_v17 = vpop.permute.xlu1 %5012 }
 0x8c3   :  { %v5038_v33 = vmul.f32 %v5013_v17, %v7799_v48  ;;  %v6119_v60 = vrot.slane %v5013_v17, %v8125_v44 }
 0x8c4   :  { %v4998_v19 = vpop.permute.xlu0 %4997 }
 0x8c5   :  { %v5064_v39 = vsel %vm4568_vm11, %v5038_v33, 0.0  ;;  %v5035_v63 = vmul.f32 %v4998_v19, %v7795_v45  ;;  %v6107_v48 = vrot.slane %v4998_v19, %v8125_v44 }
 0x8c6   :  { %v5065_v14 = vrot.slane %v5064_v39, 4  ;;  %v5023_v7 = vpop.permute.xlu1 %5022 }
 0x8c7   :  { %v5040_v31 = vmul.f32 %v5023_v7, %v7807_v47  ;;  %v5043_v25 = vsel %vm4568_vm11, %v5035_v63, 0.0  ;;  %v6127_v13 = vrot.slane %v5023_v7, %v8125_v44 }
 0x8c8   :  { %v5044_v52 = vrot.slane %v5043_v25, 4  ;;  %v5003_v16 = vpop.permute.xlu0 %5002  ;;  %v5066_v20 = vadd.f32 %v5065_v14, %v5064_v39 }
 0x8c9   :  { %v5078_v35 = vsel %vm4568_vm11, %v5040_v31, 0.0  ;;  %v5036_v8 = vmul.f32 %v5003_v16, %v7803_v50  ;;  %v6111_v61 = vrot.slane %v5003_v16, %v8125_v44 }
 0x8ca   :  { %v5033_v29 = vpop.permute.xlu1 %5032  ;;  %v5045_v42 = vadd.f32 %v5044_v52, %v5043_v25  ;;  %v5079_v22 = vrot.slane %v5078_v35, 4  ;;  %v5067_v40 = vrot.slane %v5066_v20, 2 }
 0x8cb   :  { %v5042_v45 = vmul.f32 %v5033_v29, %v7815_v34  ;;  %v5050_v47 = vsel %vm4568_vm11, %v5036_v8, 0.0  ;;  %v6136_v36 = vsel %vm4706_vm12, %v6111_v61, %v6107_v48  ;;  %v6135_v17 = vrot.slane %v5033_v29, %v8125_v44 }
 0x8cc   :  { %v5046_v27 = vrot.slane %v5045_v42, 2  ;;  %v5051_v24 = vrot.slane %v5050_v47, 4  ;;  %v5008_v3 = vpop.permute.xlu0 %5007  ;;  %v5080_v34 = vadd.f32 %v5079_v22, %v5078_v35  ;;  %v5068_v55 = vadd.f32 %v5067_v40, %v5066_v20 }
 0x8cd   :  { %v5092_v38 = vsel %vm4568_vm11, %v5042_v45, 0.0  ;;  %v5037_v62 = vmul.f32 %v5008_v3, %v7811_v53  ;;  %v6115_v46 = vrot.slane %v5008_v3, %v8125_v44 }
 0x8ce   :  { %v5047_v50 = vadd.f32 %v5046_v27, %v5045_v42  ;;  %v5052_v30 = vadd.f32 %v5051_v24, %v5050_v47  ;;  %v5093_v23 = vrot.slane %v5092_v38, 4  ;;  %v5081_v4 = vrot.slane %v5080_v34, 2 }
 0x8cf   :  { %v5057_v41 = vsel %vm4568_vm11, %v5037_v62, 0.0  ;;  %v6137_v51 = vsel %vm4708_vm13, %v6115_v46, %v6136_v36  ;;  %v5069_v31 = vrot.slane %v5068_v55, 1 }
 0x8d0   :  { %v5053_v32 = vrot.slane %v5052_v30, 2  ;;  %v5058_v28 = vrot.slane %v5057_v41, 4  ;;  %v5018_v54 = vpop.permute.xlu0 %5017  ;;  %v6138_v53 = vsel %vm4710_vm14, %v6119_v60, %v6137_v51  ;;  %v5048_v0 = vrot.slane %v5047_v50, 1 }
 0x8d1   :  { %v5039_v58 = vmul.f32 %v5018_v54, %v7819_v56  ;;  %v6123_v15 = vrot.slane %v5018_v54, %v8125_v44  ;;  %v5094_v43 = vadd.f32 %v5093_v23, %v5092_v38  ;;  %v5082_v8 = vadd.f32 %v5081_v4, %v5080_v34 }
 0x8d2   :  { %v5054_v5 = vadd.f32 %v5053_v32, %v5052_v30  ;;  %v5059_v6 = vadd.f32 %v5058_v28, %v5057_v41  ;;  %v5049_v35 = vadd.f32 %v5048_v0, %v5047_v50  ;;  %v5070_v38 = vadd.f32 %v5069_v31, %v5068_v55 }
 0x8d3   :  { %v5071_v33 = vsel %vm4568_vm11, %v5039_v58, 0.0  ;;  %v6139_v63 = vsel %vm4712_vm15, %v6123_v15, %v6138_v53  ;;  %v5095_v61 = vrot.slane %v5094_v43, 2  ;;  %v5083_v3 = vrot.slane %v5082_v8, 1 }
 0x8d4   :  { %v5055_v39 = vrot.slane %v5054_v5, 1  ;;  %v5060_v19 = vrot.slane %v5059_v6, 2  ;;  %v5072_v14 = vrot.slane %v5071_v33, 4  ;;  %v5028_v7 = vpop.permute.xlu0 %5027  ;;  %v6140_v56 = vsel %vm4714_vm2, %v6127_v13, %v6139_v63 }
 0x8d5   :  { %v5041_v25 = vmul.f32 %v5028_v7, %v7837_v21  ;;  %v6131_v52 = vrot.slane %v5028_v7, %v8125_v44  ;;  %v5096_v40 = vadd.f32 %v5095_v61, %v5094_v43  ;;  %v5084_v23 = vadd.f32 %v5083_v3, %v5082_v8 }
 0x8d6   :  { %v5056_v16 = vadd.f32 %v5055_v39, %v5054_v5  ;;  %v5061_v20 = vadd.f32 %v5060_v19, %v5059_v6  ;;  %v5073_v48 = vadd.f32 %v5072_v14, %v5071_v33 }
 0x8d7   :  { %v5085_v29 = vsel %vm4568_vm11, %v5041_v25, 0.0  ;;  %v6141_v42 = vsel %vm4716_vm3, %v6131_v52, %v6140_v56  ;;  %v5097_v41 = vrot.slane %v5096_v40, 1 }
 0x8d8   :  { %v5600_v45 = vsel %vm4706_vm12, %v5056_v16, %v5049_v35  ;;  %v5062_v22 = vrot.slane %v5061_v20, 1  ;;  %v5074_v47 = vrot.slane %v5073_v48, 2  ;;  %v5086_v36 = vrot.slane %v5085_v29, 4 }
 0x8d9   :  { %v8157_v27 = vsel %vm4718_vm4, %v6135_v17, %v6141_v42  ;;  %v5098_v13 = vadd.f32 %v5097_v41, %v5096_v40 }
 0x8da   :  { %v5063_v21 = vadd.f32 %v5062_v22, %v5061_v20  ;;  %v5075_v44 = vadd.f32 %v5074_v47, %v5073_v48  ;;  %v5087_v24 = vadd.f32 %v5086_v36, %v5085_v29  ;;  %v6204_v47 = vld [vmem:[%s8218_s9] ss:$0 sm:$0xff] }
 0x8dc   :  { %v5601_v62 = vsel %vm4708_vm13, %v5063_v21, %v5600_v45  ;;  %v5076_v50 = vrot.slane %v5075_v44, 1  ;;  %v5088_v30 = vrot.slane %v5087_v24, 2 }
 0x8dd   :  { %v5602_v46 = vsel %vm4710_vm14, %v5070_v38, %v5601_v62 }
 0x8de   :  { %v5077_v60 = vadd.f32 %v5076_v50, %v5075_v44  ;;  %v5089_v34 = vadd.f32 %v5088_v30, %v5087_v24 }
 0x8e0   :  { %v5603_v32 = vsel %vm4712_vm15, %v5077_v60, %v5602_v46  ;;  %v5090_v28 = vrot.slane %v5089_v34, 1 }
 0x8e1   :  { %v5604_v51 = vsel %vm4714_vm2, %v5084_v23, %v5603_v32 }
 0x8e2   :  { %v5091_v54 = vadd.f32 %v5090_v28, %v5089_v34 }
 0x8e4   :  { %v5605_v55 = vsel %vm4716_vm3, %v5091_v54, %v5604_v51 }
 0x8e5   :  { %v5606_v53 = vsel %vm4718_vm4, %v5098_v13, %v5605_v55 }
 0x8e6   :  { %v5607_v58 = vsel %vm117_vm1, %v5606_v53, 0 }
 0x8e7   :  { %v5678_v0 = vand.u32 4294901760, %v5607_v58 }
 0x8e9   :  { %v5679_v5 = vsub.f32 %v5607_v58, %v5678_v0  ;;  %6783 = vmatmul.mubr.f32.vlgmr.msra.gmra.mrb[14].mxu0 %v5678_v0 }
 0x8ea   :  { %6921 = vmatpush3.bf16.msra.mxu0 %v8101_v59  ;;  %6804 = vmatprep.mubr.msk.f32.mxu0 %vm7237_vm0, %v7238_v2 }
 0x8eb   :  { %6922 = vmatprep.subr.bf16.mxu0 %v7236_v1  ;;  %v5680_v6 = vand.u32 4294901760, %v5679_v5 }
 0x8ed   :  { %v5681_v15 = vsub.f32 %v5679_v5, %v5680_v6 }
 0x8ee   :  { %6924 = vmatpush3.bf16.msra.mxu0 %v8109_v9 }
 0x8ef   :  { %6931 = vmatprep.subr.bf16.mxu0 %v7236_v1  ;;  %v5682_v4 = vand.u32 4294901760, %v5681_v15 }
 0x8f1   :  { %6805 = vmatmul.mubr.f32.vlgmr.msra.gmra.mrb[16].mxu0 %v5680_v6  ;;  %6772 = vmatmul.mubr.f32.vlgmr.msra.gmra.mrb[16].mxu1 %v5682_v4 }
 0x8f2   :  { %6915 = vmatpush3.bf16.msra.mxu1 %v6914_v18  ;;  %6933 = vmatpush3.bf16.msra.mxu0 %v8101_v59 }
 0x8f3   :  { %6916 = vmatprep.subr.bf16.mxu1 %v7236_v1  ;;  %6934 = vmatprep.subr.bf16.mxu0 %v7236_v1 }
 0x8f4   :  { %6793 = vmatprep.mubr.msk.f32.mxu1 %vm7237_vm0, %v7238_v2  ;;  %6826 = vmatprep.mubr.msk.f32.mxu0 %vm7237_vm0, %v7238_v2 }
 0x8f6   :  { %6918 = vmatpush3.bf16.msra.mxu1 %v6917_v10  ;;  %6936 = vmatpush3.bf16.msra.mxu0 %v8109_v9 }
 0x8f7   :  { %6925 = vmatprep.subr.bf16.mxu1 %v7236_v1 }
 0x8f9   :  { %6794 = vmatmul.mubr.f32.vlgmr.msra.gmra.mrb[18].mxu1 %v5679_v5  ;;  %6827 = vmatmul.mubr.f32.vlgmr.msra.gmra.mrb[18].mxu0 %v5678_v0 }
 0x8fa   :  { %6927 = vmatpush3.bf16.msra.mxu1 %v8117_v11  ;;  %6815 = vmatprep.mubr.msk.f32.mxu1 %vm7237_vm0, %v7238_v2  ;;  %vm6145_vm0 = vcmask 302080  }
 0x8fb   :  { %6928 = vmatprep.subr.bf16.mxu1 %v7236_v1 }
 0x8fe   :  { %6930 = vmatpush3.bf16.msra.mxu1 %v8119_v26 }
 0x901   :  { %6816 = vmatmul.mubr.f32.vlgmr.msra.gmra.mrb[20].mxu1 %v5678_v0 }
 0x91f   :  { %v5182_v37 = vpop.f32.mrb[10].mxu1 }
 0x920   :  { %v6707_v12 = vpop.f32.mrb[11].mxu1 }
 0x921   :  { %v5273_v57 = vpop.f32.mrb[8].mxu0 }
 0x922   :  { %v5274_v49 = vadd.f32 %v5273_v57, %v5182_v37  ;;  %v6718_v59 = vpop.f32.mrb[9].mxu0 }
 0x927   :  { %v5353_v9 = vpop.f32.mrb[12].mxu1 }
 0x928   :  { %v5354_v18 = vadd.f32 %v5353_v9, %v5274_v49  ;;  %v6729_v10 = vpop.f32.mrb[13].mxu1 }
 0x929   :  { %v5430_v43 = vpop.f32.mrb[10].mxu0 }
 0x92a   :  { %v5431_v17 = vadd.f32 %v5430_v43, %v5354_v18  ;;  %v6740_v33 = vpop.f32.mrb[11].mxu0 }
 0x92f   :  { %v5513_v11 = vpop.f32.mrb[14].mxu1 }
 0x930   :  { %v5514_v39 = vadd.f32 %v5513_v11, %v5431_v17  ;;  %v6751_v19 = vpop.f32.mrb[15].mxu1 }
 0x931   :  { %v5588_v2 = vpop.f32.mrb[12].mxu0 }
 0x932   :  { %v5589_v14 = vadd.f32 %v5588_v2, %v5514_v39  ;;  %v6762_v1 = vpop.f32.mrb[13].mxu0 }
 0x9bc   :  { %v5775_v63 = vpop.f32.mrb[14].mxu0 }
 0x9bd   :  { %v6784_v26 = vpop.f32.mrb[15].mxu0 }
 0x9c4   :  { %v5932_v7 = vpop.f32.mrb[16].mxu0  ;;  %v5684_v31 = vpop.f32.mrb[16].mxu1 }
 0x9c5   :  { %v5685_v56 = vadd.f32 %v5684_v31, %v5589_v14  ;;  %v6806_v25 = vpop.f32.mrb[17].mxu0  ;;  %v6773_v52 = vpop.f32.mrb[17].mxu1 }
 0x9c7   :  { %v5776_v35 = vadd.f32 %v5775_v63, %v5685_v56 }
 0x9cc   :  { %v5855_v16 = vpop.f32.mrb[18].mxu1  ;;  %v6090_v20 = vpop.f32.mrb[18].mxu0 }
 0x9cd   :  { %v5856_v48 = vadd.f32 %v5855_v16, %v5776_v35  ;;  %v6795_v8 = vpop.f32.mrb[19].mxu1  ;;  %v6828_v61 = vpop.f32.mrb[19].mxu0 }
 0x9cf   :  { %v5933_v29 = vadd.f32 %v5932_v7, %v5856_v48 }
 0x9d4   :  { %v6015_v42 = vpop.f32.mrb[20].mxu1 }
 0x9d5   :  { %v6016_v45 = vadd.f32 %v6015_v42, %v5933_v29  ;;  %v6817_v22 = vpop.f32.mrb[21].mxu1 }
 0x9d7   :  { %v6091_v36 = vadd.f32 %v6090_v20, %v6016_v45 }
 0x9d9   :  { %v6101_v21 = vadd.f32 %v6204_v47, %v6091_v36 }
 0x9db   :  { %7086 = vtanh.f32 %v6101_v21 }
 0x9e5   :  { %v7087_v44 = vpop.eup %7086 }
 0x9e6   :  { %v6144_v24 = vsel %vm117_vm1, %v7087_v44, %v8157_v27 }
 0x9e7   :  { %v6146_v38 = vsel %vm6145_vm0, %v6144_v24, 0.0 }
 0x9e8   :  { %6147 = vst [vmem:[#allocation12] sm:$0xff] %v6146_v38 }
 0x9e9   :  { %7210 = shalt.err (!%p7207_p2)
}
 0x9ea   :  { %s7211_s20 = scalar_lea.hbm %s8219_s10, 128 }
 0x9eb   :  { %p7212_p3 = scmp.ne.s32.totalorder %s8219_s10, %s7211_s20  ;;  %p7215_p4 = scmp.lt.u32.totalorder %s7211_s20, %s8219_s10 }
 0x9ed   :  { %p7217_p5 = pnand %p7215_p4, %p7212_p3 }
 0x9ef   :  { %7220 = shalt.err (!%p7217_p5)
}
 0x9f0   :  { %6157 = dma.vmem_to_hbm [thread:$0]  %s6155_s19, 128, %s8219_s10, [#allocation5]  }
 0x9f1   :  { %7227 = dma.done.wait [#allocation5], 128  }
 0x9f2   :  { %7228 = vsyncadd [#allocation5], 4294967168 }
 0x9f3   :  { %6161 = vsyncpa [#allocation4], 1 }
 0x9f4   :  { %6162 = vsyncpa [#allocation7], 1 }
 0x9f5   :  { %6163 = vsyncpa [#allocation10], 1 }
 0x9f6   :  { %6164 = vsyncpa [#allocation5], 1 }

</bundles_post_ra>
